<compile_context>
chip_gen: v7x
topology: tpu7x:2x2x1
jax: 0.10.0
libtpu: 0.0.40
codegen_flags: <defaults>
</compile_context>

<pallas_src>
import jax
import jax.numpy as jnp
import numpy as np
from jax.experimental import pallas as pl
from jax.experimental.pallas import tpu as pltpu


def _round_up(x, m):
    return (x + m - 1) // m * m


def _pick_batch_tile(N, HW, max_lanes=2048):
    """Largest batch tile whose fused lane width fits, preferring >=2 grid steps
    (keeps both v7x TensorCores busy; irrelevant on v5e/v6e)."""
    divisors = [d for d in range(1, N + 1) if N % d == 0 and d * HW <= max_lanes]
    if not divisors:
        return 1
    multi = [d for d in divisors if N // d >= 2]
    return max(multi) if multi else max(divisors)


def make_rdb_kernel(W, HW, Nb, G0, G, C, K_cs, Kext):
    L = Nb * HW
    taps = [(kh - 1, kw - 1) for kh in range(3) for kw in range(3)]
    off_taps = [(t, dh, dw) for t, (dh, dw) in enumerate(taps)
                if not (dh == 0 and dw == 0)]

    def kernel(x_ref, mask_ref, cbias_ref, lbias_ref, *rest):
        w_refs = rest[:C]            # C conv weights, (9G, K_c) bf16 each
        wlff_ref = rest[C]           # (G0, Kext) bf16
        o_ref = rest[C + 1]          # (Nb, G0, HW)
        feat_ref = rest[C + 2]       # (Kext, L) bf16 scratch

        # ---- init bf16 dense-feature scratch ----
        #   rows [0, G0)      : input features (per fused image, lane segment)
        #   rows [G0, Ctot)   : outputs of the C conv layers (zeroed here)
        #   rows [Ctot, Kext) : zero padding to the bf16 sublane tile (16)
        # Zero-init of rows [G0, Kext) is load-bearing: uninitialized VMEM may
        # hold NaN and 0*NaN=NaN through the zero-padded weight columns.
        for b in range(Nb):
            feat_ref[0:G0, b * HW:(b + 1) * HW] = x_ref[b].astype(jnp.bfloat16)
        feat_ref[G0:Kext, :] = jnp.zeros((Kext - G0, L), jnp.bfloat16)

        # ---- C dense layers: 3x3 conv (SAME) + ReLU, concat along channels ----
        for c in range(C):
            Cin = G0 + c * G
            Kc = K_cs[c]
            # One MXU dot computes all 9 taps; only the live K prefix is read.
            p = jnp.dot(w_refs[c][...], feat_ref[0:Kc, :],
                        preferred_element_type=jnp.float32)     # (9G, L) f32
            acc = p[4 * G:5 * G, :] + cbias_ref[c]               # centre + bias
            for j, (t, dh, dw) in enumerate(off_taps):
                shift = (-(dh * W + dw)) % L
                rolled = pltpu.roll(p[t * G:(t + 1) * G, :], shift=shift, axis=1)
                acc = acc + rolled * mask_ref[j]                 # VMEM-resident mask
            # "torch.cat((x, out), 1)" == append new channel rows to the scratch
            feat_ref[Cin:Cin + G, :] = jnp.maximum(acc, 0.0).astype(jnp.bfloat16)

        # ---- LFF: 1x1 conv over all Ctot channels, then exact f32 residual ----
        y = jnp.dot(wlff_ref[...], feat_ref[...],
                    preferred_element_type=jnp.float32) + lbias_ref[...]
        for b in range(Nb):
            o_ref[b] = (y[:, b * HW:(b + 1) * HW]
                        + x_ref[b].astype(jnp.float32)).astype(o_ref.dtype)

    return kernel


def _pack_conv_weight(w, K_c):
    """OIHW (G, Cin, 3, 3) -> (9*G, K_c) bf16, taps stacked along rows
    (t = kh*3 + kw), input channels in cols [0, Cin), zero-padded to K_c."""
    G, Cin = w.shape[0], w.shape[1]
    taps = jnp.transpose(w.astype(jnp.float32), (2, 3, 0, 1)).reshape(9, G, Cin)
    wb = jnp.zeros((9, G, K_c), jnp.float32).at[:, :, :Cin].set(taps)
    return wb.reshape(9 * G, K_c).astype(jnp.bfloat16)


def _make_masks(H, W, Nb, G):
    """Per-tap output-validity masks over the fused lane axis, pre-broadcast to
    (8, G, Nb*H*W) f32 (centre tap excluded).  Also zeroes any lane where the
    in-kernel roll would wrap across an image seam."""
    HW = H * W
    r = np.arange(HW)
    h, w = r // W, r % W
    ms = []
    for kh in range(3):
        for kw in range(3):
            dh, dw = kh - 1, kw - 1
            if dh == 0 and dw == 0:
                continue
            valid = ((h + dh >= 0) & (h + dh < H) &
                     (w + dw >= 0) & (w + dw < W))
            ms.append(valid.astype(np.float32))
    m = np.tile(np.stack(ms), (1, Nb))                                  # (8, L)
    m = np.ascontiguousarray(np.broadcast_to(m[:, None, :], (8, G, Nb * HW)))
    return jnp.asarray(m)


def rdb_forward(x, conv_ws, conv_bs, lff_w, lff_b, batch_tile=None):
    """RDB forward, PyTorch-native layouts.

    x:          (N, G0, H, W)            NCHW
    conv_ws[c]: (G, G0 + c*G, 3, 3)      OIHW
    conv_bs[c]: (G,)
    lff_w:      (G0, G0 + C*G, 1, 1)     OIHW (1x1)
    lff_b:      (G0,)
    """
    N, G0, H, W = x.shape
    C = len(conv_ws)
    G = conv_ws[0].shape[0]
    Ctot = G0 + C * G
    HW = H * W

    # Layout assumptions for lane-dense, aligned MXU work (hold for this module).
    assert HW % 128 == 0 and G0 % 8 == 0 and G % 8 == 0

    Nb = batch_tile if batch_tile is not None else _pick_batch_tile(N, HW)
    assert N % Nb == 0
    L = Nb * HW

    Kext = _round_up(Ctot, 16)                       # bf16 sublane tile = 16
    K_cs = [_round_up(G0 + c * G, 16) for c in range(C)]

    # ---- pack weights / biases / masks once (outside the kernel) ----
    w_packed = [_pack_conv_weight(conv_ws[c], K_cs[c]) for c in range(C)]
    wlff = jnp.zeros((G0, Kext), jnp.float32)
    wlff = wlff.at[:, :Ctot].set(lff_w.reshape(G0, Ctot).astype(jnp.float32))
    wlff = wlff.astype(jnp.bfloat16)
    cbias = jnp.stack([b.astype(jnp.float32) for b in conv_bs]).reshape(C, G, 1)
    lbias = lff_b.astype(jnp.float32).reshape(G0, 1)
    masks = _make_masks(H, W, Nb, G)                 # (8, G, L) f32

    # Lane-dense presentation: channels on sublanes, flattened H*W on lanes.
    x2d = x.reshape(N, G0, HW)

    kernel = make_rdb_kernel(W, HW, Nb, G0, G, C, tuple(K_cs), Kext)

    in_specs = [
        pl.BlockSpec((Nb, G0, HW), lambda n: (n, 0, 0)),   # x (batch tile)
        pl.BlockSpec((8, G, L), lambda n: (0, 0, 0)),      # masks (resident)
        pl.BlockSpec((C, G, 1), lambda n: (0, 0, 0)),      # conv biases
        pl.BlockSpec((G0, 1), lambda n: (0, 0)),           # LFF bias
    ]
    for c in range(C):
        in_specs.append(pl.BlockSpec((9 * G, K_cs[c]), lambda n: (0, 0)))
    in_specs.append(pl.BlockSpec((G0, Kext), lambda n: (0, 0)))

    out2d = pl.pallas_call(
        kernel,
        out_shape=jax.ShapeDtypeStruct((N, G0, HW), x.dtype),
        grid_spec=pltpu.PrefetchScalarGridSpec(
            num_scalar_prefetch=0,
            grid=(N // Nb,),
            in_specs=in_specs,
            out_specs=pl.BlockSpec((Nb, G0, HW), lambda n: (n, 0, 0)),
            scratch_shapes=[pltpu.VMEM((Kext, L), jnp.bfloat16)]),
        compiler_params=pltpu.CompilerParams(
            dimension_semantics=("parallel",)),
    )(x2d, masks, cbias, lbias, *w_packed, wlff)
    return out2d.reshape(N, G0, H, W)


def rdb_reference(x, conv_ws, conv_bs, lff_w, lff_b):
    """Plain-JAX f32 reference mirroring the PyTorch RDB forward (NCHW)."""
    feat = x
    for w, b in zip(conv_ws, conv_bs):
        out = jax.lax.conv_general_dilated(
            feat, w, window_strides=(1, 1), padding="SAME",
            dimension_numbers=("NCHW", "OIHW", "NCHW"),
            precision=jax.lax.Precision.HIGHEST)
        feat = jnp.concatenate(
            [feat, jax.nn.relu(out + b[None, :, None, None])], axis=1)
    y = jax.lax.conv_general_dilated(
        feat, lff_w, window_strides=(1, 1), padding="SAME",
        dimension_numbers=("NCHW", "OIHW", "NCHW"),
        precision=jax.lax.Precision.HIGHEST)
    return y + lff_b[None, :, None, None] + x


if __name__ == "__main__":
    # RDB(growRate0=G0, growRate=G, nConvLayers=C) at small, TPU-friendly sizes.
    # N=4 so batch fusion (Nb=2) still leaves a 2-long grid (both v7x TCs busy).
    N, H, W = 4, 16, 16
    G0, G, C = 16, 8, 3
    Ctot = G0 + C * G

    key = jax.random.PRNGKey(0)
    key, kx = jax.random.split(key)
    x = jax.random.normal(kx, (N, G0, H, W), jnp.float32)

    conv_ws, conv_bs = [], []
    for c in range(C):
        Cin = G0 + c * G
        key, k1, k2 = jax.random.split(key, 3)
        scale = 1.0 / np.sqrt(Cin * 9)
        conv_ws.append(jax.random.uniform(k1, (G, Cin, 3, 3), jnp.float32,
                                          -scale, scale))
        conv_bs.append(jax.random.uniform(k2, (G,), jnp.float32, -scale, scale))
    key, k1, k2 = jax.random.split(key, 3)
    scale = 1.0 / np.sqrt(Ctot)
    lff_w = jax.random.uniform(k1, (G0, Ctot, 1, 1), jnp.float32, -scale, scale)
    lff_b = jax.random.uniform(k2, (G0,), jnp.float32, -scale, scale)

    out = jax.block_until_ready(rdb_forward(x, conv_ws, conv_bs, lff_w, lff_b))
    ref = jax.block_until_ready(rdb_reference(x, conv_ws, conv_bs, lff_w, lff_b))

    # bf16 MXU operands with f32 accumulation -> compare with loose tolerance.
    np.testing.assert_allclose(np.asarray(out), np.asarray(ref),
                               atol=2e-2, rtol=2e-2)

    print("KERNEL_OK")
</pallas_src>

<mosaic_0001>
module attributes {stable_mosaic.version = 11 : i64} {
  func.func @kernel(%arg0: i32, %arg1: memref<2x16x256xf32, #tpu.memory_space<vmem>>, %arg2: memref<8x8x512xf32, #tpu.memory_space<vmem>>, %arg3: memref<3x8x1xf32, #tpu.memory_space<vmem>>, %arg4: memref<16x1xf32, #tpu.memory_space<vmem>>, %arg5: memref<72x16xbf16, #tpu.memory_space<vmem>>, %arg6: memref<72x32xbf16, #tpu.memory_space<vmem>>, %arg7: memref<72x32xbf16, #tpu.memory_space<vmem>>, %arg8: memref<16x48xbf16, #tpu.memory_space<vmem>>, %arg9: memref<2x16x256xf32, #tpu.memory_space<vmem>>, %arg10: memref<48x512xbf16, #tpu.memory_space<vmem>>) attributes {dimension_semantics = [#tpu.dimension_semantics<parallel>], iteration_bounds = array<i64: 2>, scalar_prefetch = 0 : i64, scratch_operands = 1 : i64, tpu.core_type = #tpu.core_type<tc>, window_params = [{transform_indices = @transform_0, window_bounds = array<i64: 2, 16, 256>}, {pipeline_mode = #tpu.pipeline_mode<synchronous>, transform_indices = @transform_1, window_bounds = array<i64: 8, 8, 512>}, {pipeline_mode = #tpu.pipeline_mode<synchronous>, transform_indices = @transform_2, window_bounds = array<i64: 3, 8, 1>}, {pipeline_mode = #tpu.pipeline_mode<synchronous>, transform_indices = @transform_3, window_bounds = array<i64: 16, 1>}, {pipeline_mode = #tpu.pipeline_mode<synchronous>, transform_indices = @transform_4, window_bounds = array<i64: 72, 16>}, {pipeline_mode = #tpu.pipeline_mode<synchronous>, transform_indices = @transform_5, window_bounds = array<i64: 72, 32>}, {pipeline_mode = #tpu.pipeline_mode<synchronous>, transform_indices = @transform_6, window_bounds = array<i64: 72, 32>}, {pipeline_mode = #tpu.pipeline_mode<synchronous>, transform_indices = @transform_7, window_bounds = array<i64: 16, 48>}, {transform_indices = @transform_8, window_bounds = array<i64: 2, 16, 256>}]} {
    %c0 = arith.constant 0 : index
    %c0_0 = arith.constant 0 : index
    %c0_1 = arith.constant 0 : index
    %0 = vector.load %arg1[%c0, %c0_0, %c0_1] : memref<2x16x256xf32, #tpu.memory_space<vmem>>, vector<1x16x256xf32>
    %1 = vector.shape_cast %0 : vector<1x16x256xf32> to vector<16x256xf32>
    %2 = arith.truncf %1 : vector<16x256xf32> to vector<16x256xbf16>
    %c0_2 = arith.constant 0 : index
    %c0_3 = arith.constant 0 : index
    %3 = vector.load %arg10[%c0_2, %c0_3] : memref<48x512xbf16, #tpu.memory_space<vmem>>, vector<16x256xbf16>
    tpu.vector_store %arg10[%c0_2, %c0_3], %2 {strides = array<i32>} : memref<48x512xbf16, #tpu.memory_space<vmem>>, vector<16x256xbf16>,
    %c1 = arith.constant 1 : index
    %c0_4 = arith.constant 0 : index
    %c0_5 = arith.constant 0 : index
    %4 = vector.load %arg1[%c1, %c0_4, %c0_5] : memref<2x16x256xf32, #tpu.memory_space<vmem>>, vector<1x16x256xf32>
    %5 = vector.shape_cast %4 : vector<1x16x256xf32> to vector<16x256xf32>
    %6 = arith.truncf %5 : vector<16x256xf32> to vector<16x256xbf16>
    %c0_6 = arith.constant 0 : index
    %c256 = arith.constant 256 : index
    %7 = vector.load %arg10[%c0_6, %c256] : memref<48x512xbf16, #tpu.memory_space<vmem>>, vector<16x256xbf16>
    tpu.vector_store %arg10[%c0_6, %c256], %6 {strides = array<i32>} : memref<48x512xbf16, #tpu.memory_space<vmem>>, vector<16x256xbf16>,
    %cst = arith.constant 0.000000e+00 : bf16
    %8 = vector.broadcast %cst : bf16 to vector<32x512xbf16>
    %c16 = arith.constant 16 : index
    %c0_7 = arith.constant 0 : index
    %9 = vector.load %arg10[%c16, %c0_7] : memref<48x512xbf16, #tpu.memory_space<vmem>>, vector<32x512xbf16>
    tpu.vector_store %arg10[%c16, %c0_7], %8 {strides = array<i32>} : memref<48x512xbf16, #tpu.memory_space<vmem>>, vector<32x512xbf16>,
    %c0_8 = arith.constant 0 : index
    %c0_9 = arith.constant 0 : index
    %10 = vector.load %arg5[%c0_8, %c0_9] : memref<72x16xbf16, #tpu.memory_space<vmem>>, vector<72x16xbf16>
    %c0_10 = arith.constant 0 : index
    %c0_11 = arith.constant 0 : index
    %11 = vector.load %arg10[%c0_10, %c0_11] : memref<48x512xbf16, #tpu.memory_space<vmem>>, vector<16x512xbf16>
    %cst_12 = arith.constant dense<0.000000e+00> : vector<72x512xf32>
    %12 = tpu.matmul %10, %11, %cst_12 {dimension_numbers = #tpu.dot_dimension_numbers<[1], [0], [0], [1], [0, 0, 1, 1], [], []>} : vector<72x16xbf16>, vector<16x512xbf16>, vector<72x512xf32> -> vector<72x512xf32>
    %13 = vector.extract_strided_slice %12 {offsets = [32, 0], sizes = [8, 512], strides = [1, 1]} : vector<72x512xf32> to vector<8x512xf32>
    %c0_13 = arith.constant 0 : index
    %c0_14 = arith.constant 0 : index
    %c0_15 = arith.constant 0 : index
    %14 = vector.load %arg3[%c0_13, %c0_14, %c0_15] : memref<3x8x1xf32, #tpu.memory_space<vmem>>, vector<1x8x1xf32>
    %15 = vector.shape_cast %14 : vector<1x8x1xf32> to vector<8x1xf32>
    %16 = vector.broadcast %15 : vector<8x1xf32> to vector<8x512xf32>
    %17 = arith.addf %13, %16 : vector<8x512xf32>
    %18 = vector.extract_strided_slice %12 {offsets = [0, 0], sizes = [8, 512], strides = [1, 1]} : vector<72x512xf32> to vector<8x512xf32>
    %c17_i32 = arith.constant 17 : i32
    %19 = tpu.dynamic_rotate %18 by %c17_i32 dim 1 : vector<8x512xf32>, i32 -> vector<8x512xf32>
    %c0_16 = arith.constant 0 : index
    %c0_17 = arith.constant 0 : index
    %c0_18 = arith.constant 0 : index
    %20 = vector.load %arg2[%c0_16, %c0_17, %c0_18] : memref<8x8x512xf32, #tpu.memory_space<vmem>>, vector<1x8x512xf32>
    %21 = vector.shape_cast %20 : vector<1x8x512xf32> to vector<8x512xf32>
    %22 = arith.mulf %19, %21 : vector<8x512xf32>
    %23 = arith.addf %17, %22 : vector<8x512xf32>
    %24 = vector.extract_strided_slice %12 {offsets = [8, 0], sizes = [8, 512], strides = [1, 1]} : vector<72x512xf32> to vector<8x512xf32>
    %c16_i32 = arith.constant 16 : i32
    %25 = tpu.dynamic_rotate %24 by %c16_i32 dim 1 : vector<8x512xf32>, i32 -> vector<8x512xf32>
    %c1_19 = arith.constant 1 : index
    %c0_20 = arith.constant 0 : index
    %c0_21 = arith.constant 0 : index
    %26 = vector.load %arg2[%c1_19, %c0_20, %c0_21] : memref<8x8x512xf32, #tpu.memory_space<vmem>>, vector<1x8x512xf32>
    %27 = vector.shape_cast %26 : vector<1x8x512xf32> to vector<8x512xf32>
    %28 = arith.mulf %25, %27 : vector<8x512xf32>
    %29 = arith.addf %23, %28 : vector<8x512xf32>
    %30 = vector.extract_strided_slice %12 {offsets = [16, 0], sizes = [8, 512], strides = [1, 1]} : vector<72x512xf32> to vector<8x512xf32>
    %c15_i32 = arith.constant 15 : i32
    %31 = tpu.dynamic_rotate %30 by %c15_i32 dim 1 : vector<8x512xf32>, i32 -> vector<8x512xf32>
    %c2 = arith.constant 2 : index
    %c0_22 = arith.constant 0 : index
    %c0_23 = arith.constant 0 : index
    %32 = vector.load %arg2[%c2, %c0_22, %c0_23] : memref<8x8x512xf32, #tpu.memory_space<vmem>>, vector<1x8x512xf32>
    %33 = vector.shape_cast %32 : vector<1x8x512xf32> to vector<8x512xf32>
    %34 = arith.mulf %31, %33 : vector<8x512xf32>
    %35 = arith.addf %29, %34 : vector<8x512xf32>
    %36 = vector.extract_strided_slice %12 {offsets = [24, 0], sizes = [8, 512], strides = [1, 1]} : vector<72x512xf32> to vector<8x512xf32>
    %c1_i32 = arith.constant 1 : i32
    %37 = tpu.dynamic_rotate %36 by %c1_i32 dim 1 : vector<8x512xf32>, i32 -> vector<8x512xf32>
    %c3 = arith.constant 3 : index
    %c0_24 = arith.constant 0 : index
    %c0_25 = arith.constant 0 : index
    %38 = vector.load %arg2[%c3, %c0_24, %c0_25] : memref<8x8x512xf32, #tpu.memory_space<vmem>>, vector<1x8x512xf32>
    %39 = vector.shape_cast %38 : vector<1x8x512xf32> to vector<8x512xf32>
    %40 = arith.mulf %37, %39 : vector<8x512xf32>
    %41 = arith.addf %35, %40 : vector<8x512xf32>
    %42 = vector.extract_strided_slice %12 {offsets = [40, 0], sizes = [8, 512], strides = [1, 1]} : vector<72x512xf32> to vector<8x512xf32>
    %c511_i32 = arith.constant 511 : i32
    %43 = tpu.dynamic_rotate %42 by %c511_i32 dim 1 : vector<8x512xf32>, i32 -> vector<8x512xf32>
    %c4 = arith.constant 4 : index
    %c0_26 = arith.constant 0 : index
    %c0_27 = arith.constant 0 : index
    %44 = vector.load %arg2[%c4, %c0_26, %c0_27] : memref<8x8x512xf32, #tpu.memory_space<vmem>>, vector<1x8x512xf32>
    %45 = vector.shape_cast %44 : vector<1x8x512xf32> to vector<8x512xf32>
    %46 = arith.mulf %43, %45 : vector<8x512xf32>
    %47 = arith.addf %41, %46 : vector<8x512xf32>
    %48 = vector.extract_strided_slice %12 {offsets = [48, 0], sizes = [8, 512], strides = [1, 1]} : vector<72x512xf32> to vector<8x512xf32>
    %c497_i32 = arith.constant 497 : i32
    %49 = tpu.dynamic_rotate %48 by %c497_i32 dim 1 : vector<8x512xf32>, i32 -> vector<8x512xf32>
    %c5 = arith.constant 5 : index
    %c0_28 = arith.constant 0 : index
    %c0_29 = arith.constant 0 : index
    %50 = vector.load %arg2[%c5, %c0_28, %c0_29] : memref<8x8x512xf32, #tpu.memory_space<vmem>>, vector<1x8x512xf32>
    %51 = vector.shape_cast %50 : vector<1x8x512xf32> to vector<8x512xf32>
    %52 = arith.mulf %49, %51 : vector<8x512xf32>
    %53 = arith.addf %47, %52 : vector<8x512xf32>
    %54 = vector.extract_strided_slice %12 {offsets = [56, 0], sizes = [8, 512], strides = [1, 1]} : vector<72x512xf32> to vector<8x512xf32>
    %c496_i32 = arith.constant 496 : i32
    %55 = tpu.dynamic_rotate %54 by %c496_i32 dim 1 : vector<8x512xf32>, i32 -> vector<8x512xf32>
    %c6 = arith.constant 6 : index
    %c0_30 = arith.constant 0 : index
    %c0_31 = arith.constant 0 : index
    %56 = vector.load %arg2[%c6, %c0_30, %c0_31] : memref<8x8x512xf32, #tpu.memory_space<vmem>>, vector<1x8x512xf32>
    %57 = vector.shape_cast %56 : vector<1x8x512xf32> to vector<8x512xf32>
    %58 = arith.mulf %55, %57 : vector<8x512xf32>
    %59 = arith.addf %53, %58 : vector<8x512xf32>
    %60 = vector.extract_strided_slice %12 {offsets = [64, 0], sizes = [8, 512], strides = [1, 1]} : vector<72x512xf32> to vector<8x512xf32>
    %c495_i32 = arith.constant 495 : i32
    %61 = tpu.dynamic_rotate %60 by %c495_i32 dim 1 : vector<8x512xf32>, i32 -> vector<8x512xf32>
    %c7 = arith.constant 7 : index
    %c0_32 = arith.constant 0 : index
    %c0_33 = arith.constant 0 : index
    %62 = vector.load %arg2[%c7, %c0_32, %c0_33] : memref<8x8x512xf32, #tpu.memory_space<vmem>>, vector<1x8x512xf32>
    %63 = vector.shape_cast %62 : vector<1x8x512xf32> to vector<8x512xf32>
    %64 = arith.mulf %61, %63 : vector<8x512xf32>
    %65 = arith.addf %59, %64 : vector<8x512xf32>
    %cst_34 = arith.constant 0.000000e+00 : f32
    %66 = vector.broadcast %cst_34 : f32 to vector<8x512xf32>
    %67 = arith.maximumf %65, %66 : vector<8x512xf32>
    %68 = arith.truncf %67 : vector<8x512xf32> to vector<8x512xbf16>
    %c16_35 = arith.constant 16 : index
    %c0_36 = arith.constant 0 : index
    %69 = vector.load %arg10[%c16_35, %c0_36] : memref<48x512xbf16, #tpu.memory_space<vmem>>, vector<8x512xbf16>
    tpu.vector_store %arg10[%c16_35, %c0_36], %68 {strides = array<i32>} : memref<48x512xbf16, #tpu.memory_space<vmem>>, vector<8x512xbf16>,
    %c0_37 = arith.constant 0 : index
    %c0_38 = arith.constant 0 : index
    %70 = vector.load %arg6[%c0_37, %c0_38] : memref<72x32xbf16, #tpu.memory_space<vmem>>, vector<72x32xbf16>
    %c0_39 = arith.constant 0 : index
    %c0_40 = arith.constant 0 : index
    %71 = vector.load %arg10[%c0_39, %c0_40] : memref<48x512xbf16, #tpu.memory_space<vmem>>, vector<32x512xbf16>
    %cst_41 = arith.constant dense<0.000000e+00> : vector<72x512xf32>
    %72 = tpu.matmul %70, %71, %cst_41 {dimension_numbers = #tpu.dot_dimension_numbers<[1], [0], [0], [1], [0, 0, 1, 1], [], []>} : vector<72x32xbf16>, vector<32x512xbf16>, vector<72x512xf32> -> vector<72x512xf32>
    %73 = vector.extract_strided_slice %72 {offsets = [32, 0], sizes = [8, 512], strides = [1, 1]} : vector<72x512xf32> to vector<8x512xf32>
    %c1_42 = arith.constant 1 : index
    %c0_43 = arith.constant 0 : index
    %c0_44 = arith.constant 0 : index
    %74 = vector.load %arg3[%c1_42, %c0_43, %c0_44] : memref<3x8x1xf32, #tpu.memory_space<vmem>>, vector<1x8x1xf32>
    %75 = vector.shape_cast %74 : vector<1x8x1xf32> to vector<8x1xf32>
    %76 = vector.broadcast %75 : vector<8x1xf32> to vector<8x512xf32>
    %77 = arith.addf %73, %76 : vector<8x512xf32>
    %78 = vector.extract_strided_slice %72 {offsets = [0, 0], sizes = [8, 512], strides = [1, 1]} : vector<72x512xf32> to vector<8x512xf32>
    %c17_i32_45 = arith.constant 17 : i32
    %79 = tpu.dynamic_rotate %78 by %c17_i32_45 dim 1 : vector<8x512xf32>, i32 -> vector<8x512xf32>
    %c0_46 = arith.constant 0 : index
    %c0_47 = arith.constant 0 : index
    %c0_48 = arith.constant 0 : index
    %80 = vector.load %arg2[%c0_46, %c0_47, %c0_48] : memref<8x8x512xf32, #tpu.memory_space<vmem>>, vector<1x8x512xf32>
    %81 = vector.shape_cast %80 : vector<1x8x512xf32> to vector<8x512xf32>
    %82 = arith.mulf %79, %81 : vector<8x512xf32>
    %83 = arith.addf %77, %82 : vector<8x512xf32>
    %84 = vector.extract_strided_slice %72 {offsets = [8, 0], sizes = [8, 512], strides = [1, 1]} : vector<72x512xf32> to vector<8x512xf32>
    %c16_i32_49 = arith.constant 16 : i32
    %85 = tpu.dynamic_rotate %84 by %c16_i32_49 dim 1 : vector<8x512xf32>, i32 -> vector<8x512xf32>
    %c1_50 = arith.constant 1 : index
    %c0_51 = arith.constant 0 : index
    %c0_52 = arith.constant 0 : index
    %86 = vector.load %arg2[%c1_50, %c0_51, %c0_52] : memref<8x8x512xf32, #tpu.memory_space<vmem>>, vector<1x8x512xf32>
    %87 = vector.shape_cast %86 : vector<1x8x512xf32> to vector<8x512xf32>
    %88 = arith.mulf %85, %87 : vector<8x512xf32>
    %89 = arith.addf %83, %88 : vector<8x512xf32>
    %90 = vector.extract_strided_slice %72 {offsets = [16, 0], sizes = [8, 512], strides = [1, 1]} : vector<72x512xf32> to vector<8x512xf32>
    %c15_i32_53 = arith.constant 15 : i32
    %91 = tpu.dynamic_rotate %90 by %c15_i32_53 dim 1 : vector<8x512xf32>, i32 -> vector<8x512xf32>
    %c2_54 = arith.constant 2 : index
    %c0_55 = arith.constant 0 : index
    %c0_56 = arith.constant 0 : index
    %92 = vector.load %arg2[%c2_54, %c0_55, %c0_56] : memref<8x8x512xf32, #tpu.memory_space<vmem>>, vector<1x8x512xf32>
    %93 = vector.shape_cast %92 : vector<1x8x512xf32> to vector<8x512xf32>
    %94 = arith.mulf %91, %93 : vector<8x512xf32>
    %95 = arith.addf %89, %94 : vector<8x512xf32>
    %96 = vector.extract_strided_slice %72 {offsets = [24, 0], sizes = [8, 512], strides = [1, 1]} : vector<72x512xf32> to vector<8x512xf32>
    %c1_i32_57 = arith.constant 1 : i32
    %97 = tpu.dynamic_rotate %96 by %c1_i32_57 dim 1 : vector<8x512xf32>, i32 -> vector<8x512xf32>
    %c3_58 = arith.constant 3 : index
    %c0_59 = arith.constant 0 : index
    %c0_60 = arith.constant 0 : index
    %98 = vector.load %arg2[%c3_58, %c0_59, %c0_60] : memref<8x8x512xf32, #tpu.memory_space<vmem>>, vector<1x8x512xf32>
    %99 = vector.shape_cast %98 : vector<1x8x512xf32> to vector<8x512xf32>
    %100 = arith.mulf %97, %99 : vector<8x512xf32>
    %101 = arith.addf %95, %100 : vector<8x512xf32>
    %102 = vector.extract_strided_slice %72 {offsets = [40, 0], sizes = [8, 512], strides = [1, 1]} : vector<72x512xf32> to vector<8x512xf32>
    %c511_i32_61 = arith.constant 511 : i32
    %103 = tpu.dynamic_rotate %102 by %c511_i32_61 dim 1 : vector<8x512xf32>, i32 -> vector<8x512xf32>
    %c4_62 = arith.constant 4 : index
    %c0_63 = arith.constant 0 : index
    %c0_64 = arith.constant 0 : index
    %104 = vector.load %arg2[%c4_62, %c0_63, %c0_64] : memref<8x8x512xf32, #tpu.memory_space<vmem>>, vector<1x8x512xf32>
    %105 = vector.shape_cast %104 : vector<1x8x512xf32> to vector<8x512xf32>
    %106 = arith.mulf %103, %105 : vector<8x512xf32>
    %107 = arith.addf %101, %106 : vector<8x512xf32>
    %108 = vector.extract_strided_slice %72 {offsets = [48, 0], sizes = [8, 512], strides = [1, 1]} : vector<72x512xf32> to vector<8x512xf32>
    %c497_i32_65 = arith.constant 497 : i32
    %109 = tpu.dynamic_rotate %108 by %c497_i32_65 dim 1 : vector<8x512xf32>, i32 -> vector<8x512xf32>
    %c5_66 = arith.constant 5 : index
    %c0_67 = arith.constant 0 : index
    %c0_68 = arith.constant 0 : index
    %110 = vector.load %arg2[%c5_66, %c0_67, %c0_68] : memref<8x8x512xf32, #tpu.memory_space<vmem>>, vector<1x8x512xf32>
    %111 = vector.shape_cast %110 : vector<1x8x512xf32> to vector<8x512xf32>
    %112 = arith.mulf %109, %111 : vector<8x512xf32>
    %113 = arith.addf %107, %112 : vector<8x512xf32>
    %114 = vector.extract_strided_slice %72 {offsets = [56, 0], sizes = [8, 512], strides = [1, 1]} : vector<72x512xf32> to vector<8x512xf32>
    %c496_i32_69 = arith.constant 496 : i32
    %115 = tpu.dynamic_rotate %114 by %c496_i32_69 dim 1 : vector<8x512xf32>, i32 -> vector<8x512xf32>
    %c6_70 = arith.constant 6 : index
    %c0_71 = arith.constant 0 : index
    %c0_72 = arith.constant 0 : index
    %116 = vector.load %arg2[%c6_70, %c0_71, %c0_72] : memref<8x8x512xf32, #tpu.memory_space<vmem>>, vector<1x8x512xf32>
    %117 = vector.shape_cast %116 : vector<1x8x512xf32> to vector<8x512xf32>
    %118 = arith.mulf %115, %117 : vector<8x512xf32>
    %119 = arith.addf %113, %118 : vector<8x512xf32>
    %120 = vector.extract_strided_slice %72 {offsets = [64, 0], sizes = [8, 512], strides = [1, 1]} : vector<72x512xf32> to vector<8x512xf32>
    %c495_i32_73 = arith.constant 495 : i32
    %121 = tpu.dynamic_rotate %120 by %c495_i32_73 dim 1 : vector<8x512xf32>, i32 -> vector<8x512xf32>
    %c7_74 = arith.constant 7 : index
    %c0_75 = arith.constant 0 : index
    %c0_76 = arith.constant 0 : index
    %122 = vector.load %arg2[%c7_74, %c0_75, %c0_76] : memref<8x8x512xf32, #tpu.memory_space<vmem>>, vector<1x8x512xf32>
    %123 = vector.shape_cast %122 : vector<1x8x512xf32> to vector<8x512xf32>
    %124 = arith.mulf %121, %123 : vector<8x512xf32>
    %125 = arith.addf %119, %124 : vector<8x512xf32>
    %cst_77 = arith.constant 0.000000e+00 : f32
    %126 = vector.broadcast %cst_77 : f32 to vector<8x512xf32>
    %127 = arith.maximumf %125, %126 : vector<8x512xf32>
    %128 = arith.truncf %127 : vector<8x512xf32> to vector<8x512xbf16>
    %c24 = arith.constant 24 : index
    %c0_78 = arith.constant 0 : index
    %129 = vector.load %arg10[%c24, %c0_78] : memref<48x512xbf16, #tpu.memory_space<vmem>>, vector<8x512xbf16>
    tpu.vector_store %arg10[%c24, %c0_78], %128 {strides = array<i32>} : memref<48x512xbf16, #tpu.memory_space<vmem>>, vector<8x512xbf16>,
    %c0_79 = arith.constant 0 : index
    %c0_80 = arith.constant 0 : index
    %130 = vector.load %arg7[%c0_79, %c0_80] : memref<72x32xbf16, #tpu.memory_space<vmem>>, vector<72x32xbf16>
    %c0_81 = arith.constant 0 : index
    %c0_82 = arith.constant 0 : index
    %131 = vector.load %arg10[%c0_81, %c0_82] : memref<48x512xbf16, #tpu.memory_space<vmem>>, vector<32x512xbf16>
    %cst_83 = arith.constant dense<0.000000e+00> : vector<72x512xf32>
    %132 = tpu.matmul %130, %131, %cst_83 {dimension_numbers = #tpu.dot_dimension_numbers<[1], [0], [0], [1], [0, 0, 1, 1], [], []>} : vector<72x32xbf16>, vector<32x512xbf16>, vector<72x512xf32> -> vector<72x512xf32>
    %133 = vector.extract_strided_slice %132 {offsets = [32, 0], sizes = [8, 512], strides = [1, 1]} : vector<72x512xf32> to vector<8x512xf32>
    %c2_84 = arith.constant 2 : index
    %c0_85 = arith.constant 0 : index
    %c0_86 = arith.constant 0 : index
    %134 = vector.load %arg3[%c2_84, %c0_85, %c0_86] : memref<3x8x1xf32, #tpu.memory_space<vmem>>, vector<1x8x1xf32>
    %135 = vector.shape_cast %134 : vector<1x8x1xf32> to vector<8x1xf32>
    %136 = vector.broadcast %135 : vector<8x1xf32> to vector<8x512xf32>
    %137 = arith.addf %133, %136 : vector<8x512xf32>
    %138 = vector.extract_strided_slice %132 {offsets = [0, 0], sizes = [8, 512], strides = [1, 1]} : vector<72x512xf32> to vector<8x512xf32>
    %c17_i32_87 = arith.constant 17 : i32
    %139 = tpu.dynamic_rotate %138 by %c17_i32_87 dim 1 : vector<8x512xf32>, i32 -> vector<8x512xf32>
    %c0_88 = arith.constant 0 : index
    %c0_89 = arith.constant 0 : index
    %c0_90 = arith.constant 0 : index
    %140 = vector.load %arg2[%c0_88, %c0_89, %c0_90] : memref<8x8x512xf32, #tpu.memory_space<vmem>>, vector<1x8x512xf32>
    %141 = vector.shape_cast %140 : vector<1x8x512xf32> to vector<8x512xf32>
    %142 = arith.mulf %139, %141 : vector<8x512xf32>
    %143 = arith.addf %137, %142 : vector<8x512xf32>
    %144 = vector.extract_strided_slice %132 {offsets = [8, 0], sizes = [8, 512], strides = [1, 1]} : vector<72x512xf32> to vector<8x512xf32>
    %c16_i32_91 = arith.constant 16 : i32
    %145 = tpu.dynamic_rotate %144 by %c16_i32_91 dim 1 : vector<8x512xf32>, i32 -> vector<8x512xf32>
    %c1_92 = arith.constant 1 : index
    %c0_93 = arith.constant 0 : index
    %c0_94 = arith.constant 0 : index
    %146 = vector.load %arg2[%c1_92, %c0_93, %c0_94] : memref<8x8x512xf32, #tpu.memory_space<vmem>>, vector<1x8x512xf32>
    %147 = vector.shape_cast %146 : vector<1x8x512xf32> to vector<8x512xf32>
    %148 = arith.mulf %145, %147 : vector<8x512xf32>
    %149 = arith.addf %143, %148 : vector<8x512xf32>
    %150 = vector.extract_strided_slice %132 {offsets = [16, 0], sizes = [8, 512], strides = [1, 1]} : vector<72x512xf32> to vector<8x512xf32>
    %c15_i32_95 = arith.constant 15 : i32
    %151 = tpu.dynamic_rotate %150 by %c15_i32_95 dim 1 : vector<8x512xf32>, i32 -> vector<8x512xf32>
    %c2_96 = arith.constant 2 : index
    %c0_97 = arith.constant 0 : index
    %c0_98 = arith.constant 0 : index
    %152 = vector.load %arg2[%c2_96, %c0_97, %c0_98] : memref<8x8x512xf32, #tpu.memory_space<vmem>>, vector<1x8x512xf32>
    %153 = vector.shape_cast %152 : vector<1x8x512xf32> to vector<8x512xf32>
    %154 = arith.mulf %151, %153 : vector<8x512xf32>
    %155 = arith.addf %149, %154 : vector<8x512xf32>
    %156 = vector.extract_strided_slice %132 {offsets = [24, 0], sizes = [8, 512], strides = [1, 1]} : vector<72x512xf32> to vector<8x512xf32>
    %c1_i32_99 = arith.constant 1 : i32
    %157 = tpu.dynamic_rotate %156 by %c1_i32_99 dim 1 : vector<8x512xf32>, i32 -> vector<8x512xf32>
    %c3_100 = arith.constant 3 : index
    %c0_101 = arith.constant 0 : index
    %c0_102 = arith.constant 0 : index
    %158 = vector.load %arg2[%c3_100, %c0_101, %c0_102] : memref<8x8x512xf32, #tpu.memory_space<vmem>>, vector<1x8x512xf32>
    %159 = vector.shape_cast %158 : vector<1x8x512xf32> to vector<8x512xf32>
    %160 = arith.mulf %157, %159 : vector<8x512xf32>
    %161 = arith.addf %155, %160 : vector<8x512xf32>
    %162 = vector.extract_strided_slice %132 {offsets = [40, 0], sizes = [8, 512], strides = [1, 1]} : vector<72x512xf32> to vector<8x512xf32>
    %c511_i32_103 = arith.constant 511 : i32
    %163 = tpu.dynamic_rotate %162 by %c511_i32_103 dim 1 : vector<8x512xf32>, i32 -> vector<8x512xf32>
    %c4_104 = arith.constant 4 : index
    %c0_105 = arith.constant 0 : index
    %c0_106 = arith.constant 0 : index
    %164 = vector.load %arg2[%c4_104, %c0_105, %c0_106] : memref<8x8x512xf32, #tpu.memory_space<vmem>>, vector<1x8x512xf32>
    %165 = vector.shape_cast %164 : vector<1x8x512xf32> to vector<8x512xf32>
    %166 = arith.mulf %163, %165 : vector<8x512xf32>
    %167 = arith.addf %161, %166 : vector<8x512xf32>
    %168 = vector.extract_strided_slice %132 {offsets = [48, 0], sizes = [8, 512], strides = [1, 1]} : vector<72x512xf32> to vector<8x512xf32>
    %c497_i32_107 = arith.constant 497 : i32
    %169 = tpu.dynamic_rotate %168 by %c497_i32_107 dim 1 : vector<8x512xf32>, i32 -> vector<8x512xf32>
    %c5_108 = arith.constant 5 : index
    %c0_109 = arith.constant 0 : index
    %c0_110 = arith.constant 0 : index
    %170 = vector.load %arg2[%c5_108, %c0_109, %c0_110] : memref<8x8x512xf32, #tpu.memory_space<vmem>>, vector<1x8x512xf32>
    %171 = vector.shape_cast %170 : vector<1x8x512xf32> to vector<8x512xf32>
    %172 = arith.mulf %169, %171 : vector<8x512xf32>
    %173 = arith.addf %167, %172 : vector<8x512xf32>
    %174 = vector.extract_strided_slice %132 {offsets = [56, 0], sizes = [8, 512], strides = [1, 1]} : vector<72x512xf32> to vector<8x512xf32>
    %c496_i32_111 = arith.constant 496 : i32
    %175 = tpu.dynamic_rotate %174 by %c496_i32_111 dim 1 : vector<8x512xf32>, i32 -> vector<8x512xf32>
    %c6_112 = arith.constant 6 : index
    %c0_113 = arith.constant 0 : index
    %c0_114 = arith.constant 0 : index
    %176 = vector.load %arg2[%c6_112, %c0_113, %c0_114] : memref<8x8x512xf32, #tpu.memory_space<vmem>>, vector<1x8x512xf32>
    %177 = vector.shape_cast %176 : vector<1x8x512xf32> to vector<8x512xf32>
    %178 = arith.mulf %175, %177 : vector<8x512xf32>
    %179 = arith.addf %173, %178 : vector<8x512xf32>
    %180 = vector.extract_strided_slice %132 {offsets = [64, 0], sizes = [8, 512], strides = [1, 1]} : vector<72x512xf32> to vector<8x512xf32>
    %c495_i32_115 = arith.constant 495 : i32
    %181 = tpu.dynamic_rotate %180 by %c495_i32_115 dim 1 : vector<8x512xf32>, i32 -> vector<8x512xf32>
    %c7_116 = arith.constant 7 : index
    %c0_117 = arith.constant 0 : index
    %c0_118 = arith.constant 0 : index
    %182 = vector.load %arg2[%c7_116, %c0_117, %c0_118] : memref<8x8x512xf32, #tpu.memory_space<vmem>>, vector<1x8x512xf32>
    %183 = vector.shape_cast %182 : vector<1x8x512xf32> to vector<8x512xf32>
    %184 = arith.mulf %181, %183 : vector<8x512xf32>
    %185 = arith.addf %179, %184 : vector<8x512xf32>
    %cst_119 = arith.constant 0.000000e+00 : f32
    %186 = vector.broadcast %cst_119 : f32 to vector<8x512xf32>
    %187 = arith.maximumf %185, %186 : vector<8x512xf32>
    %188 = arith.truncf %187 : vector<8x512xf32> to vector<8x512xbf16>
    %c32 = arith.constant 32 : index
    %c0_120 = arith.constant 0 : index
    %189 = vector.load %arg10[%c32, %c0_120] : memref<48x512xbf16, #tpu.memory_space<vmem>>, vector<8x512xbf16>
    tpu.vector_store %arg10[%c32, %c0_120], %188 {strides = array<i32>} : memref<48x512xbf16, #tpu.memory_space<vmem>>, vector<8x512xbf16>,
    %c0_121 = arith.constant 0 : index
    %c0_122 = arith.constant 0 : index
    %190 = vector.load %arg8[%c0_121, %c0_122] : memref<16x48xbf16, #tpu.memory_space<vmem>>, vector<16x48xbf16>
    %c0_123 = arith.constant 0 : index
    %c0_124 = arith.constant 0 : index
    %191 = vector.load %arg10[%c0_123, %c0_124] : memref<48x512xbf16, #tpu.memory_space<vmem>>, vector<48x512xbf16>
    %cst_125 = arith.constant dense<0.000000e+00> : vector<16x512xf32>
    %192 = tpu.matmul %190, %191, %cst_125 {dimension_numbers = #tpu.dot_dimension_numbers<[1], [0], [0], [1], [0, 0, 1, 1], [], []>} : vector<16x48xbf16>, vector<48x512xbf16>, vector<16x512xf32> -> vector<16x512xf32>
    %c0_126 = arith.constant 0 : index
    %c0_127 = arith.constant 0 : index
    %193 = vector.load %arg4[%c0_126, %c0_127] : memref<16x1xf32, #tpu.memory_space<vmem>>, vector<16x1xf32>
    %194 = vector.broadcast %193 : vector<16x1xf32> to vector<16x512xf32>
    %195 = arith.addf %192, %194 : vector<16x512xf32>
    %196 = vector.extract_strided_slice %195 {offsets = [0, 0], sizes = [16, 256], strides = [1, 1]} : vector<16x512xf32> to vector<16x256xf32>
    %c0_128 = arith.constant 0 : index
    %c0_129 = arith.constant 0 : index
    %c0_130 = arith.constant 0 : index
    %197 = vector.load %arg1[%c0_128, %c0_129, %c0_130] : memref<2x16x256xf32, #tpu.memory_space<vmem>>, vector<1x16x256xf32>
    %198 = vector.shape_cast %197 : vector<1x16x256xf32> to vector<16x256xf32>
    %199 = arith.addf %196, %198 : vector<16x256xf32>
    %c0_131 = arith.constant 0 : index
    %c0_132 = arith.constant 0 : index
    %c0_133 = arith.constant 0 : index
    %200 = vector.load %arg9[%c0_131, %c0_132, %c0_133] : memref<2x16x256xf32, #tpu.memory_space<vmem>>, vector<1x16x256xf32>
    %201 = vector.shape_cast %200 : vector<1x16x256xf32> to vector<16x256xf32>
    %202 = vector.shape_cast %199 : vector<16x256xf32> to vector<1x16x256xf32>
    tpu.vector_store %arg9[%c0_131, %c0_132, %c0_133], %202 {strides = array<i32>} : memref<2x16x256xf32, #tpu.memory_space<vmem>>, vector<1x16x256xf32>,
    %203 = vector.extract_strided_slice %195 {offsets = [0, 256], sizes = [16, 256], strides = [1, 1]} : vector<16x512xf32> to vector<16x256xf32>
    %c1_134 = arith.constant 1 : index
    %c0_135 = arith.constant 0 : index
    %c0_136 = arith.constant 0 : index
    %204 = vector.load %arg1[%c1_134, %c0_135, %c0_136] : memref<2x16x256xf32, #tpu.memory_space<vmem>>, vector<1x16x256xf32>
    %205 = vector.shape_cast %204 : vector<1x16x256xf32> to vector<16x256xf32>
    %206 = arith.addf %203, %205 : vector<16x256xf32>
    %c1_137 = arith.constant 1 : index
    %c0_138 = arith.constant 0 : index
    %c0_139 = arith.constant 0 : index
    %207 = vector.load %arg9[%c1_137, %c0_138, %c0_139] : memref<2x16x256xf32, #tpu.memory_space<vmem>>, vector<1x16x256xf32>
    %208 = vector.shape_cast %207 : vector<1x16x256xf32> to vector<16x256xf32>
    %209 = vector.shape_cast %206 : vector<16x256xf32> to vector<1x16x256xf32>
    tpu.vector_store %arg9[%c1_137, %c0_138, %c0_139], %209 {strides = array<i32>} : memref<2x16x256xf32, #tpu.memory_space<vmem>>, vector<1x16x256xf32>,
    return
  }
  func.func @transform_0(%arg0: i32) -> (i32, i32, i32) {
    %c0_i32 = arith.constant 0 : i32
    %c0_i32_0 = arith.constant 0 : i32
    %c0_i32_1 = arith.constant 0 : i32
    return %arg0, %c0_i32, %c0_i32_0 : i32, i32, i32
  }
  func.func @transform_1(%arg0: i32) -> (i32, i32, i32) {
    %c0_i32 = arith.constant 0 : i32
    %c0_i32_0 = arith.constant 0 : i32
    %c0_i32_1 = arith.constant 0 : i32
    %c0_i32_2 = arith.constant 0 : i32
    return %c0_i32, %c0_i32_0, %c0_i32_1 : i32, i32, i32
  }
  func.func @transform_2(%arg0: i32) -> (i32, i32, i32) {
    %c0_i32 = arith.constant 0 : i32
    %c0_i32_0 = arith.constant 0 : i32
    %c0_i32_1 = arith.constant 0 : i32
    %c0_i32_2 = arith.constant 0 : i32
    return %c0_i32, %c0_i32_0, %c0_i32_1 : i32, i32, i32
  }
  func.func @transform_3(%arg0: i32) -> (i32, i32) {
    %c0_i32 = arith.constant 0 : i32
    %c0_i32_0 = arith.constant 0 : i32
    %c0_i32_1 = arith.constant 0 : i32
    return %c0_i32, %c0_i32_0 : i32, i32
  }
  func.func @transform_4(%arg0: i32) -> (i32, i32) {
    %c0_i32 = arith.constant 0 : i32
    %c0_i32_0 = arith.constant 0 : i32
    %c0_i32_1 = arith.constant 0 : i32
    return %c0_i32, %c0_i32_0 : i32, i32
  }
  func.func @transform_5(%arg0: i32) -> (i32, i32) {
    %c0_i32 = arith.constant 0 : i32
    %c0_i32_0 = arith.constant 0 : i32
    %c0_i32_1 = arith.constant 0 : i32
    return %c0_i32, %c0_i32_0 : i32, i32
  }
  func.func @transform_6(%arg0: i32) -> (i32, i32) {
    %c0_i32 = arith.constant 0 : i32
    %c0_i32_0 = arith.constant 0 : i32
    %c0_i32_1 = arith.constant 0 : i32
    return %c0_i32, %c0_i32_0 : i32, i32
  }
  func.func @transform_7(%arg0: i32) -> (i32, i32) {
    %c0_i32 = arith.constant 0 : i32
    %c0_i32_0 = arith.constant 0 : i32
    %c0_i32_1 = arith.constant 0 : i32
    return %c0_i32, %c0_i32_0 : i32, i32
  }
  func.func @transform_8(%arg0: i32) -> (i32, i32, i32) {
    %c0_i32 = arith.constant 0 : i32
    %c0_i32_0 = arith.constant 0 : i32
    %c0_i32_1 = arith.constant 0 : i32
    return %arg0, %c0_i32, %c0_i32_0 : i32, i32, i32
  }
}

</mosaic_0001>

<bundles_post_ra>
// kernel: tpu_custom_call.1
= control target key start
LH: loop header
LB: loop body
LE: loop exit
PB: predicated region body
PF: predicated region fallthrough
CT: control target
= control target key end

     0   :  { %13 = vsyncpa [#allocation4], 0  ;;  %s3070_s0 = inlined_call_operand.vmem [shape: f32[4,16,256], index: 0, kind: input, shape index: {}]   ;;  %s3071_s1 = inlined_call_operand.hbm [shape: f32[8,8,512], index: 1, kind: input, shape index: {}]   ;;  %s3072_s2 = inlined_call_operand.vmem [shape: f32[3,8,1], index: 2, kind: input, shape index: {}]   ;;  %s3073_s3 = inlined_call_operand.vmem [shape: f32[16,1], index: 3, kind: input, shape index: {}]   ;;  %s3074_s4 = inlined_call_operand.vmem [shape: bf16[72,16], index: 4, kind: input, shape index: {}]   ;;  %s3075_s5 = inlined_call_operand.vmem [shape: bf16[72,32], index: 5, kind: input, shape index: {}]   ;;  %s3076_s6 = inlined_call_operand.vmem [shape: bf16[72,32], index: 6, kind: input, shape index: {}]   ;;  %s3077_s7 = inlined_call_operand.vmem [shape: bf16[16,48], index: 7, kind: input, shape index: {}]   ;;  %s3078_s8 = inlined_call_operand.hbm [shape: f32[4,16,256], index: 8, kind: output, shape index: {}]  }
   0x1   :  { %14 = vsyncpa [#allocation5], 0 }
   0x2   :  { %16 = vsyncpa [#allocation5 + $0x1], 0  ;;  %s2225_s27 = smov 0   ;;  %s2227_s28 = smov 0  }
   0x3   :  { %s2229_s29 = smov 0   ;;  %s2231_s30 = smov 0  }
   0x4 LB: > { %s2246_s9 = sadd.s32 4294967295, %s2164_s30   ;;  %s1908_s10 = sadd.s32 4294967294, %s2164_s30   ;;  %s2164_s30 = sphi %s2231_s30, %s3128_s30   ;;  %s2160_s29 = sphi %s2229_s29, %s3127_s29   ;;  %s2156_s28 = sphi %s2227_s28, %s3126_s28   ;;  %s2152_s27 = sphi %s2225_s27, %s3125_s27  }
   0x5   : > { %s2250_s11 = sadd.s32 1, %s2164_s30   ;;  %s202_s12 = sadd.s32 1, %s2160_s29 }
   0x6   : > { %s199_s13 = ssub.s32 %s2164_s30, %s2250_s11  ;;  %p212_p0 = scmp.ne.s32.totalorder %s2160_s29, %s2156_s28 }
   0x7   : > { %p200_p1 = scmp.eq.s32.totalorder %s199_s13, 0  ;;  %p213_p2 = scmp.eq.s32.totalorder %s2246_s9, 1 }
   0x8   : > { %p218_p3 = scmp.ne.s32.totalorder %s2156_s28, %s2152_s27  ;;  %p219_p4 = scmp.eq.s32.totalorder %s1908_s10, 1 }
   0x9   : > { %s2261_s14 = scalar_select %p200_p1, %s2160_s29, %s202_s12  }
   0xa   : > { %p2263_p5 = por %p213_p2, %p212_p0  ;;  %p2267_p6 = por %p219_p4, %p218_p3 }
   0xb   : > { %p1909_p7 = scmp.ge.s32.totalorder %s2164_s30, 1  ;;  %p226_p8 = scmp.lt.s32.totalorder %s2164_s30, 3 }
   0xc   : > { %s3095_s15 = scalar_select %p2263_p5, 1, 0 }
   0xd   : > { %s3096_s16 = scalar_select %p2267_p6, 1, 0 }
   0xe   : > { %p3079_p9 = scmp.eq.s32.totalorder %s2246_s9, 0  ;;  %p2274_p10 = pnand %p1909_p7, %p226_p8 }
   0xf   : > { %s2166_s18 = smov [#allocation3]   ;;  %s2070_s23 = scalar_lea.hbm %s3071_s1, 4096 }
  0x10   : > { %s3097_s17 = scalar_select %p2274_p10, 1, 0 }
  0x11   : > { %s238_s19 = sshll.u32 %s2166_s18, 4  ;;  %p1995_p11 = pneg %p2274_p10  ;;  %s239_s19 = int_to_ptr.vmem [resolvable:$true] %s238_s19 }
  0x12   : > { %p2071_p13 = scmp.ne.s32.totalorder %s3071_s1, %s2070_s23  ;;  %p2077_p3 = scmp.lt.u32.totalorder %s2070_s23, %s3071_s1 }
  0x13   : > { %p2282_p12 = pnand %p3079_p9, %p1995_p11 }
  0x15   : > { %p2072_p0 = pneg %p2282_p12 }
  0x17   : > { %p2073_p1 = pnand %p2072_p0, %p2071_p13 }
  0x19   : > { %p2074_p2 = pneg %p2073_p1 }
  0x1b   : > { %p2079_p4 = pnand %p2077_p3, %p2074_p2 }
  0x1d   : > { %2082 = shalt.err (!%p2079_p4)
}
  0x1e   : > { %s2083_s12 = scalar_lea.vmem %s239_s19, 4096  ;;  %p2091_p9 = scmp.lt.s32.totalorder %s239_s19, %s239_s19 }
  0x1f   : > { %p2084_p7 = scmp.ne.s32.totalorder %s239_s19, %s2083_s12  ;;  %p2092_p6 = scmp.lt.s32.totalorder %s2083_s12, %s2083_s12 }
  0x21   : > { %p2086_p8 = pnand %p2084_p7, %p2072_p0  ;;  %p2093_p5 = por %p2092_p6, %p2091_p9 }
  0x23   : > { %p2087_p11 = pneg %p2086_p8 }
  0x25   : > { %p2094_p10 = pnand %p2093_p5, %p2087_p11 }
  0x27   : > { %2097 = shalt.err (!%p2094_p10)
}
  0x28   : > { %s2167_s13 = smov 512   ;;  %s2168_s18 = smov 32  }
  0x29   : > { %1998 = dma.hbm_to_vmem [thread:$0]  (!%p2282_p12), %s3071_s1, 4096, %s239_s19, [#allocation4], %s2167_s13, %s2167_s13, %s2168_s18  }
  0x2a   : > { %p3099_p13 = scmp.ne.s32.totalorder %s3097_s17, 0 }
  0x2c   : > { %282 = sbr.rel (%p3099_p13) target bundleno = 1529 (0x5f9), region = 52 }
  0x33   : > { %p3100_p1 = scmp.eq.s32.totalorder %s2246_s9, 0 }
  0x35   : > { %2143 = dma.done.wait (%p3100_p1), [#allocation4], 4096   ;;  %p3101_p0 = pmov %p3100_p1 }
  0x36   : > { %s1915_s23 = sshll.u32 %s2246_s9, 1  ;;  %v2169_v0 = vmov 0   ;;  %v2053_v13 = vld [vmem:[%s3074_s4] sm:$0xff]   ;;  %vm387_vm0 = vcmask 130048   ;;  %v2054_v15 = vld [vmem:[%s3074_s4 + $0x8] sm:$0xff]   ;;  %v2055_v16 = vld [vmem:[%s3074_s4 + $0x10] sm:$0xff]  }
  0x37   : > { %2145 = vsyncadd (%p3101_p0), [#allocation4], 4294963200  ;;  %p2309_p5 = scmp.lt.s32.totalorder %s1915_s23, 3  ;;  %435 = vmatprep.mubr.bf16.mxu0 %v2169_v0  ;;  %343 = vst [vmem:[#allocation2 + $0x20] sm:$0xff] %v2169_v0  ;;  %516 = vmatprep.mubr.bf16.mxu1 %v2169_v0  ;;  %v565_v14 = vld [vmem:[%s3072_s2] sm:$0xff]  ;;  %v2056_v17 = vld [vmem:[%s3074_s4 + $0x18] sm:$0xff]  }
  0x38   : > { %344 = vst [vmem:[#allocation2 + $0x28] sm:$0xff] %v2169_v0  ;;  %345 = vst [vmem:[#allocation2 + $0x30] sm:$0xff] %v2169_v0  ;;  %2051 = vset.pattern.permute.xlu0 %v2169_v0  ;;  %2052 = vset.pattern.permute.xlu1 %v2169_v0  ;;  %v2057_v18 = vld [vmem:[%s3074_s4 + $0x20] ss:$0 sps:$4 sm:$0xff]   ;;  %s2170_s26 = smov 17   ;;  %s2171_s10 = smov 16  }
  0x39   : > { %346 = vst [vmem:[#allocation2 + $0x38] sm:$0xff] %v2169_v0  ;;  %347 = vst [vmem:[#allocation2 + $0x40] sm:$0xff] %v2169_v0  ;;  %s3130_s23 = smov (!%p2309_p5, %s1915_s23), 3  ;;  %568 = vperm.xlu0 %2051, %v565_v14   ;;  %s2172_s12 = smov 15   ;;  %v1952_v59 = vld [vmem:[%s3072_s2 + $0x8] sm:$0xff]  ;;  %vm836_vm9 = vcmask 261120  }
  0x3a   : > { %348 = vst [vmem:[#allocation2 + $0x48] sm:$0xff] %v2169_v0  ;;  %349 = vst [vmem:[#allocation2 + $0x50] sm:$0xff] %v2169_v0  ;;  %s1986_s17 = sshll.u32 %s3130_s23, 5  ;;  %s2173_s13 = smov 1   ;;  %vm1704_vm10 = vcmask 392192  }
  0x3b   : > { %350 = vst [vmem:[#allocation2 + $0x58] sm:$0xff] %v2169_v0  ;;  %s2330_s25 = scalar_lea.vmem %s3070_s0, %s1986_s17  ;;  %s2174_s18 = smov 127  }
  0x3c   : > { %v327_v1 = vld [vmem:[%s2330_s25 + $0x8] sm:$0xff]  ;;  %v329_v2 = vld [vmem:[%s2330_s25 + $0x18] sm:$0xff]  ;;  %v326_v6 = vld [vmem:[%s2330_s25] sm:$0xff]  ;;  %s2175_s21 = smov 113   ;;  %s3093_s22 = smov 112  }
  0x3d   : > { %v1919_v3 = vld [vmem:[%s2330_s25 + $0x28] sm:$0xff]  ;;  %v331_v4 = vpack.c.bf16 %v329_v2, %v327_v1  ;;  %v1921_v5 = vld [vmem:[%s2330_s25 + $0x38] sm:$0xff]  ;;  %v328_v7 = vld [vmem:[%s2330_s25 + $0x10] sm:$0xff]  ;;  %s3091_s23 = smov 111   ;;  %s314_s20 = sand.u32 1, %s2156_s28  }
  0x3e   : > { %v340_v8 = vpack.c.bf16 %v1921_v5, %v1919_v3  ;;  %v330_v9 = vpack.c.bf16 %v328_v7, %v326_v6  ;;  %v1918_v10 = vld [vmem:[%s2330_s25 + $0x20] sm:$0xff]  ;;  %v1920_v11 = vld [vmem:[%s2330_s25 + $0x30] sm:$0xff]  ;;  %s1914_s24 = sshll.u32 %s314_s20, 6  ;;  %p3123_p9 = scmp.ne.s32.totalorder %s3095_s15, 0 }
  0x3f   : > { %333 = vst [vmem:[#allocation2 + $0x8] sm:$0xff] %v331_v4  ;;  %403 = vmatprep.subr.bf16.mxu0 %v331_v4  ;;  %v339_v12 = vpack.c.bf16 %v1920_v11, %v1918_v10  ;;  %s316_s17 = scalar_lea.vmem [#allocation6], %s1914_s24 }
  0x40   : > { %342 = vst [vmem:[#allocation2 + $0x18] sm:$0xff] %v340_v8  ;;  %484 = vmatprep.subr.bf16.mxu1 %v340_v8  ;;  %332 = vst [vmem:[#allocation2] sm:$0xff] %v330_v9  ;;  %404 = vmatpush1.bf16.msra.mxu0 %v330_v9 }
  0x41   : > { %341 = vst [vmem:[#allocation2 + $0x10] sm:$0xff] %v339_v12  ;;  %485 = vmatpush1.bf16.msra.mxu1 %v339_v12  ;;  %852 = vmatprep.subr.bf16.mxu0 %v331_v4 }
  0x42   : > { %933 = vmatprep.subr.bf16.mxu1 %v340_v8 }
  0x43   : > { %1927 = vmatmul.mubr.msk.bf16.vlgmr.msra.gmra.mrb[0].mxu0 %vm387_vm0, %v2053_v13 }
  0x44   : > { %1932 = vmatmul.mubr.msk.bf16.vlgmr.msra.gmra.mrb[0].mxu1 %vm387_vm0, %v2053_v13  ;;  %445 = vmatprep.mubr.bf16.mxu0 %v2169_v0 }
  0x45   : > { %526 = vmatprep.mubr.bf16.mxu1 %v2169_v0  ;;  %853 = vmatpush1.bf16.msra.mxu0 %v330_v9 }
  0x46   : > { %934 = vmatpush1.bf16.msra.mxu1 %v339_v12  ;;  %v583_v12 = vlaneseq }
  0x4b   : > { %1928 = vmatmul.mubr.msk.bf16.gmra.mrb[4].mxu0 %vm387_vm0, %v2054_v15 }
  0x4c   : > { %1933 = vmatmul.mubr.msk.bf16.gmra.mrb[4].mxu1 %vm387_vm0, %v2054_v15  ;;  %455 = vmatprep.mubr.bf16.mxu0 %v2169_v0  ;;  %v2429_v15 = vand.u32 127, %v583_v12 }
  0x4d   : > { %536 = vmatprep.mubr.bf16.mxu1 %v2169_v0 }
  0x4e   : > { %vm585_vm1 = vcmp.lt.s32.totalorder %v2429_v15, 17  ;;  %vm610_vm2 = vcmp.lt.s32.totalorder %v2429_v15, 16  ;;  %vm636_vm3 = vcmp.lt.s32.totalorder %v2429_v15, 15  ;;  %vm662_vm4 = vcmp.lt.s32.totalorder %v2429_v15, 1 }
  0x4f   : > { %vm688_vm5 = vcmp.lt.s32.totalorder %v2429_v15, 127  ;;  %vm714_vm6 = vcmp.lt.s32.totalorder %v2429_v15, 113  ;;  %vm740_vm7 = vcmp.lt.s32.totalorder %v2429_v15, 112  ;;  %vm766_vm8 = vcmp.lt.s32.totalorder %v2429_v15, 111 }
  0x53   : > { %1929 = vmatmul.mubr.msk.bf16.gmra.mrb[8].mxu0 %vm387_vm0, %v2055_v16 }
  0x54   : > { %1934 = vmatmul.mubr.msk.bf16.gmra.mrb[8].mxu1 %vm387_vm0, %v2055_v16  ;;  %465 = vmatprep.mubr.bf16.mxu0 %v2169_v0 }
  0x55   : > { %546 = vmatprep.mubr.bf16.mxu1 %v2169_v0 }
  0x5b   : > { %1930 = vmatmul.mubr.msk.bf16.gmra.mrb[12].mxu0 %vm387_vm0, %v2056_v17 }
  0x5c   : > { %1935 = vmatmul.mubr.msk.bf16.gmra.mrb[12].mxu1 %vm387_vm0, %v2056_v17  ;;  %475 = vmatprep.mubr.bf16.mxu0 %v2169_v0 }
  0x5d   : > { %556 = vmatprep.mubr.bf16.mxu1 %v2169_v0 }
  0x63   : > { %1931 = vmatmul.mubr.msk.bf16.gmra.mrb[16].mxu0 %vm387_vm0, %v2057_v18 }
  0x64   : > { %1936 = vmatmul.mubr.msk.bf16.gmra.mrb[16].mxu1 %vm387_vm0, %v2057_v18  ;;  %884 = vmatprep.mubr.bf16.mxu0 %v2169_v0 }
  0x65   : > { %965 = vmatprep.mubr.bf16.mxu1 %v2169_v0 }
  0xb8   : > { %v569_v60 = vpop.permute.xlu0 %568 }
 0x116   : > { %v437_v19 = vpop.f32.mrb[0].mxu0 }
 0x117   : > { %v518_v20 = vpop.f32.mrb[0].mxu1  ;;  %575 = vrot.lane.b32.xlu0 %v437_v19, %s2170_s26  ;;  %v439_v21 = vpop.f32.mrb[1].mxu0  ;;  %v2439_v19 = vld [vmem:[#allocation3] sm:$0xff] }
 0x118   : > { %579 = vrot.lane.b32.xlu1 %v518_v20, %s2170_s26  ;;  %v520_v22 = vpop.f32.mrb[1].mxu1  ;;  %v441_v23 = vpop.f32.mrb[2].mxu0 }
 0x119   : > { %v522_v24 = vpop.f32.mrb[2].mxu1  ;;  %v443_v25 = vpop.f32.mrb[3].mxu0 }
 0x11a   : > { %v524_v26 = vpop.f32.mrb[3].mxu1 }
 0x11b   : > { %581 = vrot.lane.b32.xlu0 %v520_v22, %s2170_s26 }
 0x11c   : > { %577 = vrot.lane.b32.xlu1 %v439_v21, %s2170_s26  ;;  %v2443_v21 = vld [vmem:[#allocation3 + $0x8] sm:$0xff] }
 0x11e   : > { %v447_v27 = vpop.f32.mrb[4].mxu0 }
 0x11f   : > { %604 = vrot.lane.b32.xlu0 %v443_v25, %s2171_s10  ;;  %v449_v28 = vpop.f32.mrb[5].mxu0  ;;  %v528_v29 = vpop.f32.mrb[4].mxu1 }
 0x120   : > { %602 = vrot.lane.b32.xlu1 %v441_v23, %s2171_s10  ;;  %v451_v30 = vpop.f32.mrb[6].mxu0  ;;  %v530_v31 = vpop.f32.mrb[5].mxu1 }
 0x121   : > { %v453_v32 = vpop.f32.mrb[7].mxu0  ;;  %v532_v33 = vpop.f32.mrb[6].mxu1 }
 0x122   : > { %v534_v34 = vpop.f32.mrb[7].mxu1 }
 0x123   : > { %608 = vrot.lane.b32.xlu0 %v524_v26, %s2171_s10  ;;  %v2452_v26 = vld [vmem:[#allocation3 + $0x10] sm:$0xff] }
 0x124   : > { %606 = vrot.lane.b32.xlu1 %v522_v24, %s2171_s10 }
 0x126   : > { %v2386_v35 = vpop.f32.mrb[8].mxu0 }
 0x127   : > { %630 = vrot.lane.b32.xlu0 %v449_v28, %s2172_s12  ;;  %v2389_v36 = vpop.f32.mrb[9].mxu0  ;;  %v2391_v37 = vpop.f32.mrb[8].mxu1  ;;  %v571_v25 = vadd.f32 %v569_v60, %v2386_v35 }
 0x128   : > { %628 = vrot.lane.b32.xlu1 %v447_v27, %s2172_s12  ;;  %v461_v38 = vpop.f32.mrb[10].mxu0  ;;  %v2394_v39 = vpop.f32.mrb[9].mxu1  ;;  %v573_v24 = vadd.f32 %v569_v60, %v2391_v37  ;;  %v2469_v37 = vld [vmem:[#allocation3 + $0x30] sm:$0xff] }
 0x129   : > { %v463_v40 = vpop.f32.mrb[11].mxu0  ;;  %v542_v41 = vpop.f32.mrb[10].mxu1  ;;  %v574_v28 = vadd.f32 %v569_v60, %v2394_v39  ;;  %v2473_v39 = vld [vmem:[#allocation3 + $0x20] sm:$0xff] }
 0x12a   : > { %v544_v42 = vpop.f32.mrb[11].mxu1 }
 0x12b   : > { %634 = vrot.lane.b32.xlu0 %v530_v31, %s2172_s12  ;;  %v572_v31 = vadd.f32 %v569_v60, %v2389_v36 }
 0x12c   : > { %632 = vrot.lane.b32.xlu1 %v528_v29, %s2172_s12  ;;  %v2458_v29 = vld [vmem:[#allocation3 + $0x18] sm:$0xff] }
 0x12e   : > { %v467_v43 = vpop.f32.mrb[12].mxu0 }
 0x12f   : > { %656 = vrot.lane.b32.xlu0 %v453_v32, %s2173_s13  ;;  %v469_v44 = vpop.f32.mrb[13].mxu0  ;;  %v548_v45 = vpop.f32.mrb[12].mxu1  ;;  %v2463_v32 = vld [vmem:[#allocation3 + $0x28] sm:$0xff] }
 0x130   : > { %654 = vrot.lane.b32.xlu1 %v451_v30, %s2173_s13  ;;  %v471_v46 = vpop.f32.mrb[14].mxu0  ;;  %v550_v47 = vpop.f32.mrb[13].mxu1 }
 0x131   : > { %v473_v48 = vpop.f32.mrb[15].mxu0  ;;  %v552_v49 = vpop.f32.mrb[14].mxu1 }
 0x132   : > { %v554_v50 = vpop.f32.mrb[15].mxu1 }
 0x133   : > { %660 = vrot.lane.b32.xlu0 %v534_v34, %s2173_s13 }
 0x134   : > { %658 = vrot.lane.b32.xlu1 %v532_v33, %s2173_s13 }
 0x136   : > { %v477_v51 = vpop.f32.mrb[16].mxu0 }
 0x137   : > { %682 = vrot.lane.b32.xlu0 %v463_v40, %s2174_s18  ;;  %v479_v52 = vpop.f32.mrb[17].mxu0  ;;  %v558_v53 = vpop.f32.mrb[16].mxu1 }
 0x138   : > { %680 = vrot.lane.b32.xlu1 %v461_v38, %s2174_s18  ;;  %v481_v54 = vpop.f32.mrb[18].mxu0  ;;  %v560_v55 = vpop.f32.mrb[17].mxu1 }
 0x139   : > { %v482_v56 = vpop.f32.mrb[19].mxu0  ;;  %v562_v57 = vpop.f32.mrb[18].mxu1 }
 0x13a   : > { %v563_v58 = vpop.f32.mrb[19].mxu1 }
 0x13b   : > { %686 = vrot.lane.b32.xlu0 %v544_v42, %s2174_s18  ;;  %v2480_v42 = vld [vmem:[#allocation3 + $0x38] sm:$0xff] }
 0x13c   : > { %684 = vrot.lane.b32.xlu1 %v542_v41, %s2174_s18 }
 0x13f   : > { %708 = vrot.lane.b32.xlu0 %v469_v44, %s2175_s21 }
 0x140   : > { %706 = vrot.lane.b32.xlu1 %v467_v43, %s2175_s21 }
 0x143   : > { %712 = vrot.lane.b32.xlu0 %v550_v47, %s2175_s21  ;;  %v2490_v47 = vld [vmem:[#allocation3 + $0x48] sm:$0xff] }
 0x144   : > { %710 = vrot.lane.b32.xlu1 %v548_v45, %s2175_s21 }
 0x147   : > { %734 = vrot.lane.b32.xlu0 %v473_v48, %s3093_s22 }
 0x148   : > { %732 = vrot.lane.b32.xlu1 %v471_v46, %s3093_s22 }
 0x14b   : > { %738 = vrot.lane.b32.xlu0 %v554_v50, %s3093_s22 }
 0x14c   : > { %736 = vrot.lane.b32.xlu1 %v552_v49, %s3093_s22  ;;  %v2494_v49 = vld [vmem:[#allocation3 + $0x40] sm:$0xff] }
 0x14f   : > { %760 = vrot.lane.b32.xlu0 %v479_v52, %s3091_s23 }
 0x150   : > { %758 = vrot.lane.b32.xlu1 %v477_v51, %s3091_s23 }
 0x153   : > { %764 = vrot.lane.b32.xlu0 %v560_v55, %s3091_s23  ;;  %v2504_v55 = vld [vmem:[#allocation3 + $0x58] sm:$0xff] }
 0x154   : > { %762 = vrot.lane.b32.xlu1 %v558_v53, %s3091_s23  ;;  %v2500_v53 = vld [vmem:[#allocation3 + $0x50] sm:$0xff] }
 0x158   : > { %1018 = vperm.xlu1 %2052, %v1952_v59  }
 0x189   : > { %v576_v61 = vpop.permute.xlu0 %575 }
 0x18a   : > { %v580_v62 = vpop.permute.xlu1 %579 }
 0x18d   : > { %v582_v63 = vpop.permute.xlu0 %581 }
 0x18e   : > { %v578_v1 = vpop.permute.xlu1 %577  ;;  %v589_v20 = vsel %vm585_vm1, %v582_v63, %v576_v61  ;;  %v586_v30 = vsel %vm585_vm1, %v580_v62, %v582_v63 }
 0x18f   : > { %v588_v22 = vsel %vm585_vm1, %v576_v61, %v578_v1  ;;  %v587_v27 = vsel %vm585_vm1, %v578_v1, %v580_v62  ;;  %v594_v34 = vmul.f32 %v2439_v19, %v589_v20  ;;  %v597_v45 = vmul.f32 %v2458_v29, %v586_v30  ;;  %v2512_v1 = vld [vmem:[#allocation3 + $0x60] sm:$0xff] }
 0x190   : > { %v595_v35 = vmul.f32 %v2443_v21, %v588_v22  ;;  %v596_v41 = vmul.f32 %v2452_v26, %v587_v27 }
 0x191   : > { %v605_v2 = vpop.permute.xlu0 %604  ;;  %v598_v57 = vadd.f32 %v594_v34, %v571_v25  ;;  %v2540_v34 = vld [vmem:[#allocation3 + $0x70] sm:$0xff] }
 0x192   : > { %v603_v3 = vpop.permute.xlu1 %602  ;;  %v599_v58 = vadd.f32 %v595_v35, %v572_v31  ;;  %v600_v61 = vadd.f32 %v596_v41, %v573_v24  ;;  %v2527_v24 = vld [vmem:[#allocation3 + $0x68] sm:$0xff] }
 0x193   : > { %v613_v33 = vsel %vm610_vm2, %v603_v3, %v605_v2 }
 0x194   : > { %v621_v46 = vmul.f32 %v2463_v32, %v613_v33 }
 0x195   : > { %v609_v4 = vpop.permute.xlu0 %608 }
 0x196   : > { %v607_v5 = vpop.permute.xlu1 %606  ;;  %v614_v40 = vsel %vm610_vm2, %v609_v4, %v603_v3 }
 0x197   : > { %v612_v38 = vsel %vm610_vm2, %v605_v2, %v607_v5  ;;  %v611_v43 = vsel %vm610_vm2, %v607_v5, %v609_v4  ;;  %v620_v52 = vmul.f32 %v2473_v39, %v614_v40  ;;  %v601_v4 = vadd.f32 %v597_v45, %v574_v28  ;;  %v2534_v28 = vld [vmem:[#allocation3 + $0x80] sm:$0xff] }
 0x198   : > { %v622_v51 = vmul.f32 %v2469_v37, %v612_v38  ;;  %v623_v59 = vmul.f32 %v2480_v42, %v611_v43  ;;  %v2547_v43 = vld [vmem:[#allocation3 + $0x98] sm:$0xff] }
 0x199   : > { %v631_v6 = vpop.permute.xlu0 %630  ;;  %v624_v20 = vadd.f32 %v620_v52, %v598_v57  ;;  %v2567_v52 = vld [vmem:[#allocation3 + $0x90] sm:$0xff]  ;;  %v2574_v57 = vld [vmem:[#allocation3 + $0xb8] sm:$0xff] }
 0x19a   : > { %v629_v7 = vpop.permute.xlu1 %628  ;;  %v626_v12 = vadd.f32 %v622_v51, %v600_v61  ;;  %v627_v22 = vadd.f32 %v623_v59, %v601_v4  ;;  %v2579_v59 = vld [vmem:[#allocation3 + $0xc0] sm:$0xff] }
 0x19b   : > { %v639_v48 = vsel %vm636_vm3, %v629_v7, %v631_v6 }
 0x19c   : > { %v647_v62 = vmul.f32 %v2490_v47, %v639_v48 }
 0x19d   : > { %v635_v8 = vpop.permute.xlu0 %634 }
 0x19e   : > { %v633_v9 = vpop.permute.xlu1 %632  ;;  %v640_v50 = vsel %vm636_vm3, %v635_v8, %v629_v7  ;;  %v2520_v7 = vld [vmem:[#allocation3 + $0x78] sm:$0xff] }
 0x19f   : > { %v638_v54 = vsel %vm636_vm3, %v631_v6, %v633_v9  ;;  %v637_v56 = vsel %vm636_vm3, %v633_v9, %v635_v8  ;;  %v646_v63 = vmul.f32 %v2494_v49, %v640_v50  ;;  %v625_v9 = vadd.f32 %v621_v46, %v599_v58  ;;  %v2553_v46 = vld [vmem:[#allocation3 + $0xa0] sm:$0xff]  ;;  %v2561_v50 = vld [vmem:[#allocation3 + $0x88] sm:$0xff] }
 0x1a0   : > { %v648_v5 = vmul.f32 %v2500_v53, %v638_v54  ;;  %v649_v6 = vmul.f32 %v2504_v55, %v637_v56 }
 0x1a1   : > { %v2421_v10 = vpop.permute.xlu0 %656  ;;  %v651_v31 = vadd.f32 %v647_v62, %v625_v9  ;;  %v650_v33 = vadd.f32 %v646_v63, %v624_v20  ;;  %v2596_v9 = vld [vmem:[#allocation3 + $0xd8] sm:$0xff] }
 0x1a2   : > { %v2423_v11 = vpop.permute.xlu1 %654  ;;  %v652_v40 = vadd.f32 %v648_v5, %v626_v12  ;;  %v653_v41 = vadd.f32 %v649_v6, %v627_v22  ;;  %v2592_v6 = vld [vmem:[#allocation3 + $0xb0] sm:$0xff]  ;;  %3103 = vst [vmem:[#allocation9_spill] sm:$0xff] %v2596_v9 }
 0x1a3   : > { %v665_v25 = vsel %vm662_vm4, %v2423_v11, %v2421_v10 }
 0x1a5   : > { %v2425_v13 = vpop.permute.xlu0 %660 }
 0x1a6   : > { %v2427_v14 = vpop.permute.xlu1 %658  ;;  %v666_v2 = vsel %vm662_vm4, %v2425_v13, %v2423_v11 }
 0x1a7   : > { %v663_v8 = vsel %vm662_vm4, %v2427_v14, %v2425_v13  ;;  %v672_v27 = vmul.f32 %v2512_v1, %v666_v2  ;;  %v664_v35 = vsel %vm662_vm4, %v2421_v10, %v2427_v14  ;;  %v673_v10 = vmul.f32 %v2527_v24, %v665_v25  ;;  %v2602_v25 = vld [vmem:[#allocation3 + $0xc8] sm:$0xff] }
 0x1a8   : > { %v675_v11 = vmul.f32 %v2520_v7, %v663_v8  ;;  %v674_v54 = vmul.f32 %v2540_v34, %v664_v35 }
 0x1a9   : > { %v2431_v16 = vpop.permute.xlu0 %682  ;;  %v676_v56 = vadd.f32 %v672_v27, %v650_v33 }
 0x1aa   : > { %v2433_v17 = vpop.permute.xlu1 %680  ;;  %v679_v62 = vadd.f32 %v675_v11, %v653_v41  ;;  %v678_v33 = vadd.f32 %v674_v54, %v652_v40  ;;  %v2611_v11 = vld [vmem:[#allocation3 + $0xe0] sm:$0xff] }
 0x1ab   : > { %v691_v13 = vsel %vm688_vm5, %v2433_v17, %v2431_v16  ;;  %3104 = vst [vmem:[#allocation10_spill] sm:$0xff] %v2611_v11 }
 0x1ac   : > { %v698_v14 = vmul.f32 %v2534_v28, %v691_v13  ;;  %v677_v13 = vadd.f32 %v673_v10, %v651_v31 }
 0x1ad   : > { %v2437_v18 = vpop.permute.xlu0 %686 }
 0x1ae   : > { %v2448_v23 = vpop.permute.xlu1 %684  ;;  %v692_v45 = vsel %vm688_vm5, %v2437_v18, %v2433_v17  ;;  %v702_v20 = vadd.f32 %v698_v14, %v676_v56 }
 0x1af   : > { %v690_v51 = vsel %vm688_vm5, %v2431_v16, %v2448_v23  ;;  %v689_v17 = vsel %vm688_vm5, %v2448_v23, %v2437_v18  ;;  %v701_v63 = vmul.f32 %v2547_v43, %v692_v45  ;;  %v2585_v23 = vld [vmem:[#allocation3 + $0xa8] sm:$0xff] }
 0x1b0   : > { %v700_v5 = vmul.f32 %v2567_v52, %v689_v17 }
 0x1b1   : > { %v2477_v36 = vpop.permute.xlu0 %708  ;;  %v705_v41 = vadd.f32 %v701_v63, %v679_v62  ;;  %v2622_v62 = vld [vmem:[#allocation3 + $0xe8] sm:$0xff]  ;;  %v2624_v63 = vld [vmem:[#allocation3 + $0xf0] sm:$0xff] }
 0x1b2   : > { %v2485_v44 = vpop.permute.xlu1 %706  ;;  %v704_v31 = vadd.f32 %v700_v5, %v678_v33  ;;  %3106 = vst [vmem:[#allocation12_spill] sm:$0xff] %v2622_v62  ;;  %3107 = vst [vmem:[#allocation13_spill] sm:$0xff] %v2624_v63 }
 0x1b3   : > { %v717_v48 = vsel %vm714_vm6, %v2485_v44, %v2477_v36 }
 0x1b4   : > { %v724_v18 = vmul.f32 %v2553_v46, %v717_v48 }
 0x1b5   : > { %v713_v60 = vpop.permute.xlu0 %712 }
 0x1b6   : > { %v711_v3 = vpop.permute.xlu1 %710  ;;  %v718_v58 = vsel %vm714_vm6, %v713_v60, %v2485_v44  ;;  %v699_v44 = vmul.f32 %v2561_v50, %v690_v51  ;;  %v728_v45 = vadd.f32 %v724_v18, %v702_v20 }
 0x1b7   : > { %v716_v2 = vsel %vm714_vm6, %v2477_v36, %v711_v3  ;;  %v715_v8 = vsel %vm714_vm6, %v711_v3, %v713_v60  ;;  %v727_v22 = vmul.f32 %v2574_v57, %v718_v58  ;;  %v2607_v60 = vld [vmem:[#allocation3 + $0xd0] sm:$0xff] }
 0x1b8   : > { %v725_v35 = vmul.f32 %v2585_v23, %v716_v2  ;;  %v726_v48 = vmul.f32 %v2592_v6, %v715_v8 }
 0x1b9   : > { %v735_v30 = vpop.permute.xlu0 %734  ;;  %v731_v17 = vadd.f32 %v727_v22, %v705_v41 }
 0x1ba   : > { %v733_v38 = vpop.permute.xlu1 %732  ;;  %v730_v2 = vadd.f32 %v726_v48, %v704_v31 }
 0x1bb   : > { %v743_v16 = vsel %vm740_vm7, %v733_v38, %v735_v30 }
 0x1bc   : > { %v750_v36 = vmul.f32 %v2579_v59, %v743_v16  ;;  %v2620_v16 = vld [vmem:[#allocation3 + $0xf8] sm:$0xff] }
 0x1bd   : > { %v739_v61 = vpop.permute.xlu0 %738  ;;  %3105 = vst [vmem:[#allocation11_spill] sm:$0xff] %v2620_v16 }
 0x1be   : > { %v737_v4 = vpop.permute.xlu1 %736  ;;  %v744_v12 = vsel %vm740_vm7, %v739_v61, %v733_v38  ;;  %v754_v54 = vadd.f32 %v750_v36, %v728_v45 }
 0x1bf   : > { %v742_v27 = vsel %vm740_vm7, %v735_v30, %v737_v4  ;;  %v741_v3 = vsel %vm740_vm7, %v737_v4, %v739_v61  ;;  %v753_v14 = vmul.f32 %v2596_v9, %v744_v12  ;;  %v703_v30 = vadd.f32 %v699_v44, %v677_v13 }
 0x1c0   : > { %v751_v40 = vmul.f32 %v2602_v25, %v742_v27  ;;  %v752_v56 = vmul.f32 %v2607_v60, %v741_v3 }
 0x1c1   : > { %v761_v38 = vpop.permute.xlu0 %760  ;;  %v729_v61 = vadd.f32 %v725_v35, %v703_v30  ;;  %v757_v4 = vadd.f32 %v753_v14, %v731_v17 }
 0x1c2   : > { %v759_v51 = vpop.permute.xlu1 %758  ;;  %v756_v27 = vadd.f32 %v752_v56, %v730_v2  ;;  %v2058_v56 = vld [vmem:[%s3075_s5] sm:$0xff]   ;;  %v2061_v2 = vld [vmem:[%s3075_s5 + $0x18] sm:$0xff]  }
 0x1c3   : > { %v769_v10 = vsel %vm766_vm8, %v759_v51, %v761_v38  ;;  %v755_v12 = vadd.f32 %v751_v40, %v729_v61  ;;  %v2059_v61 = vld [vmem:[%s3075_s5 + $0x8] sm:$0xff]  }
 0x1c4   : > { %v776_v58 = vmul.f32 %v2611_v11, %v769_v10 }
 0x1c5   : > { %v765_v18 = vpop.permute.xlu0 %764 }
 0x1c6   : > { %v780_v44 = vadd.f32 %v776_v58, %v754_v54  ;;  %v763_v5 = vpop.permute.xlu1 %762  ;;  %v770_v8 = vsel %vm766_vm8, %v765_v18, %v759_v51 }
 0x1c7   : > { %v768_v20 = vsel %vm766_vm8, %v761_v38, %v763_v5  ;;  %v767_v22 = vsel %vm766_vm8, %v763_v5, %v765_v18  ;;  %v779_v36 = vmul.f32 %v2620_v16, %v770_v8  ;;  %v2060_v18 = vld [vmem:[%s3075_s5 + $0x10] sm:$0xff]  }
 0x1c8   : > { %v784_v13 = vmax.f32 %v780_v44, 0.0  ;;  %v777_v33 = vmul.f32 %v2622_v62, %v768_v20  ;;  %v778_v35 = vmul.f32 %v2624_v63, %v767_v22 }
 0x1c9   : > { %v783_v3 = vadd.f32 %v779_v36, %v757_v4  ;;  %v2062_v4 = vld [vmem:[%s3075_s5 + $0x20] ss:$0 sps:$4 sm:$0xff]  }
 0x1ca   : > { %v788_v41 = vpack.c.bf16 %v784_v13, %v784_v13  ;;  %v781_v45 = vadd.f32 %v777_v33, %v755_v12  ;;  %v782_v48 = vadd.f32 %v778_v35, %v756_v27 }
 0x1cb   : > { %v787_v14 = vmax.f32 %v783_v3, 0.0 }
 0x1cc   : > { %792 = vst [vmem:[#allocation2 + $0x20] sm:$0xf] %v788_v41  ;;  %v785_v51 = vmax.f32 %v781_v45, 0.0  ;;  %v786_v30 = vmax.f32 %v782_v48, 0.0 }
 0x1cd   : > { %v791_v38 = vpack.c.bf16 %v787_v14, %v787_v14 }
 0x1ce   : > { %v789_v31 = vpack.c.bf16 %v785_v51, %v785_v51  ;;  %v790_v40 = vpack.c.bf16 %v786_v30, %v786_v30 }
 0x1cf   : > { %795 = vst [vmem:[#allocation2 + $0x38] sm:$0xf] %v791_v38 }
 0x1d0   : > { %793 = vst [vmem:[#allocation2 + $0x28] sm:$0xf] %v789_v31  ;;  %794 = vst [vmem:[#allocation2 + $0x30] sm:$0xf] %v790_v40 }
 0x1d3   : > { %v809_v58 = vld [vmem:[#allocation2 + $0x20] sm:$0xff] }
 0x1d6   : > { %v812_v10 = vld [vmem:[#allocation2 + $0x38] sm:$0xff] }
 0x1d7   : > { %v810_v17 = vld [vmem:[#allocation2 + $0x28] sm:$0xff]  ;;  %935 = vmatprep.subr.bf16.mxu1 %v812_v10  ;;  %v811_v54 = vld [vmem:[#allocation2 + $0x30] sm:$0xff] }
 0x1d8   : > { %854 = vmatprep.subr.bf16.mxu0 %v810_v17  ;;  %936 = vmatpush1.bf16.msra.mxu1 %v811_v54 }
 0x1d9   : > { %855 = vmatpush1.bf16.msra.mxu0 %v809_v58 }
 0x1db   : > { %1947 = vmatmul.mubr.msk.bf16.vlgmr.msra.gmra.mrb[20].mxu1 %vm836_vm9, %v2058_v56 }
 0x1dc   : > { %1942 = vmatmul.mubr.msk.bf16.vlgmr.msra.gmra.mrb[20].mxu0 %vm836_vm9, %v2058_v56  ;;  %975 = vmatprep.mubr.bf16.mxu1 %v2169_v0 }
 0x1dd   : > { %894 = vmatprep.mubr.bf16.mxu0 %v2169_v0 }
 0x1e3   : > { %1948 = vmatmul.mubr.msk.bf16.gmra.mrb[24].mxu1 %vm836_vm9, %v2059_v61 }
 0x1e4   : > { %1943 = vmatmul.mubr.msk.bf16.gmra.mrb[24].mxu0 %vm836_vm9, %v2059_v61  ;;  %985 = vmatprep.mubr.bf16.mxu1 %v2169_v0 }
 0x1e5   : > { %904 = vmatprep.mubr.bf16.mxu0 %v2169_v0 }
 0x1eb   : > { %1949 = vmatmul.mubr.msk.bf16.gmra.mrb[28].mxu1 %vm836_vm9, %v2060_v18 }
 0x1ec   : > { %1944 = vmatmul.mubr.msk.bf16.gmra.mrb[28].mxu0 %vm836_vm9, %v2060_v18  ;;  %995 = vmatprep.mubr.bf16.mxu1 %v2169_v0 }
 0x1ed   : > { %914 = vmatprep.mubr.bf16.mxu0 %v2169_v0 }
 0x1f3   : > { %1950 = vmatmul.mubr.msk.bf16.gmra.mrb[32].mxu1 %vm836_vm9, %v2061_v2 }
 0x1f4   : > { %1945 = vmatmul.mubr.msk.bf16.gmra.mrb[32].mxu0 %vm836_vm9, %v2061_v2  ;;  %1005 = vmatprep.mubr.bf16.mxu1 %v2169_v0 }
 0x1f5   : > { %924 = vmatprep.mubr.bf16.mxu0 %v2169_v0 }
 0x1fb   : > { %1951 = vmatmul.mubr.msk.bf16.gmra.mrb[36].mxu1 %vm836_vm9, %v2062_v4 }
 0x1fc   : > { %1946 = vmatmul.mubr.msk.bf16.gmra.mrb[36].mxu0 %vm836_vm9, %v2062_v4  ;;  %1409 = vmatprep.mubr.bf16.mxu1 %v2169_v0 }
 0x1fd   : > { %1328 = vmatprep.mubr.bf16.mxu0 %v2169_v0 }
 0x2ae   : > { %v967_v44 = vpop.f32.mrb[20].mxu1 }
 0x2af   : > { %v886_v5 = vpop.f32.mrb[20].mxu0  ;;  %v969_v8 = vpop.f32.mrb[21].mxu1 }
 0x2b0   : > { %1025 = vrot.lane.b32.xlu0 %v886_v5, %s2170_s26  ;;  %v888_v12 = vpop.f32.mrb[21].mxu0  ;;  %v971_v20 = vpop.f32.mrb[22].mxu1 }
 0x2b1   : > { %1027 = vrot.lane.b32.xlu1 %v888_v12, %s2170_s26  ;;  %v890_v22 = vpop.f32.mrb[22].mxu0  ;;  %v973_v36 = vpop.f32.mrb[23].mxu1 }
 0x2b2   : > { %v892_v27 = vpop.f32.mrb[23].mxu0 }
 0x2b4   : > { %1029 = vrot.lane.b32.xlu0 %v967_v44, %s2170_s26 }
 0x2b5   : > { %1031 = vrot.lane.b32.xlu1 %v969_v8, %s2170_s26 }
 0x2b6   : > { %v977_v13 = vpop.f32.mrb[24].mxu1 }
 0x2b7   : > { %v896_v33 = vpop.f32.mrb[24].mxu0  ;;  %v979_v35 = vpop.f32.mrb[25].mxu1 }
 0x2b8   : > { %1049 = vrot.lane.b32.xlu0 %v890_v22, %s2171_s10  ;;  %v898_v0 = vpop.f32.mrb[25].mxu0  ;;  %v981_v3 = vpop.f32.mrb[26].mxu1 }
 0x2b9   : > { %1051 = vrot.lane.b32.xlu1 %v892_v27, %s2171_s10  ;;  %v900_v41 = vpop.f32.mrb[26].mxu0  ;;  %v983_v45 = vpop.f32.mrb[27].mxu1 }
 0x2ba   : > { %v902_v48 = vpop.f32.mrb[27].mxu0 }
 0x2bc   : > { %1053 = vrot.lane.b32.xlu0 %v971_v20, %s2171_s10 }
 0x2bd   : > { %1055 = vrot.lane.b32.xlu1 %v973_v36, %s2171_s10 }
 0x2be   : > { %v2678_v14 = vpop.f32.mrb[28].mxu1 }
 0x2bf   : > { %v2680_v51 = vpop.f32.mrb[28].mxu0  ;;  %v2682_v30 = vpop.f32.mrb[29].mxu1 }
 0x2c0   : > { %1073 = vrot.lane.b32.xlu0 %v896_v33, %s2172_s12  ;;  %v2685_v38 = vpop.f32.mrb[29].mxu0  ;;  %v991_v31 = vpop.f32.mrb[30].mxu1  ;;  %v2706_v33 = vld [vmem:[#allocation2 + $0x8] sm:$0xff] }
 0x2c1   : > { %1075 = vrot.lane.b32.xlu1 %v898_v0, %s2172_s12  ;;  %v910_v40 = vpop.f32.mrb[30].mxu0  ;;  %v993_v10 = vpop.f32.mrb[31].mxu1  ;;  %3108 = vst [vmem:[#allocation14_spill] sm:$0xff] %v2706_v33  ;;  %1296 = vmatprep.subr.bf16.mxu0 %v2706_v33  ;;  %v2714_v0 = vld [vmem:[#allocation2 + $0x18] sm:$0xff] }
 0x2c2   : > { %v912_v17 = vpop.f32.mrb[31].mxu0  ;;  %3110 = vst [vmem:[#allocation16_spill] sm:$0xff] %v2714_v0  ;;  %1377 = vmatprep.subr.bf16.mxu1 %v2714_v0 }
 0x2c4   : > { %1077 = vrot.lane.b32.xlu0 %v977_v13, %s2172_s12 }
 0x2c5   : > { %1079 = vrot.lane.b32.xlu1 %v979_v35, %s2172_s12  ;;  %v2711_v35 = vld [vmem:[#allocation2] sm:$0xff] }
 0x2c6   : > { %v997_v54 = vpop.f32.mrb[32].mxu1  ;;  %3109 = vst [vmem:[#allocation15_spill] sm:$0xff] %v2711_v35  ;;  %1297 = vmatpush1.bf16.msra.mxu0 %v2711_v35 }
 0x2c7   : > { %v916_v56 = vpop.f32.mrb[32].mxu0  ;;  %v999_v58 = vpop.f32.mrb[33].mxu1 }
 0x2c8   : > { %1097 = vrot.lane.b32.xlu0 %v900_v41, %s2173_s13  ;;  %v918_v61 = vpop.f32.mrb[33].mxu0  ;;  %v1001_v18 = vpop.f32.mrb[34].mxu1  ;;  %v1968_v41 = vld [vmem:[%s3072_s2 + $0x10] sm:$0xff] }
 0x2c9   : > { %1099 = vrot.lane.b32.xlu1 %v902_v48, %s2173_s13  ;;  %v920_v2 = vpop.f32.mrb[34].mxu0  ;;  %v1003_v4 = vpop.f32.mrb[35].mxu1 }
 0x2ca   : > { %v922_v44 = vpop.f32.mrb[35].mxu0 }
 0x2cc   : > { %1101 = vrot.lane.b32.xlu0 %v981_v3, %s2173_s13  ;;  %v2716_v3 = vld [vmem:[#allocation2 + $0x10] sm:$0xff] }
 0x2cd   : > { %1103 = vrot.lane.b32.xlu1 %v983_v45, %s2173_s13  ;;  %3111 = vst [vmem:[#allocation17_spill] sm:$0xff] %v2716_v3  ;;  %1378 = vmatpush1.bf16.msra.mxu1 %v2716_v3  ;;  %v1019_v45 = vpop.permute.xlu1 %1018 }
 0x2ce   : > { %v1007_v5 = vpop.f32.mrb[36].mxu1  ;;  %v1023_v0 = vadd.f32 %v1019_v45, %v2678_v14  ;;  %v1022_v63 = vadd.f32 %v1019_v45, %v2685_v38 }
 0x2cf   : > { %v926_v8 = vpop.f32.mrb[36].mxu0  ;;  %v1009_v12 = vpop.f32.mrb[37].mxu1 }
 0x2d0   : > { %1121 = vrot.lane.b32.xlu0 %v910_v40, %s2174_s18  ;;  %v928_v20 = vpop.f32.mrb[37].mxu0  ;;  %v1011_v22 = vpop.f32.mrb[38].mxu1 }
 0x2d1   : > { %1123 = vrot.lane.b32.xlu1 %v912_v17, %s2174_s18  ;;  %v930_v36 = vpop.f32.mrb[38].mxu0  ;;  %v1012_v27 = vpop.f32.mrb[39].mxu1 }
 0x2d2   : > { %v931_v13 = vpop.f32.mrb[39].mxu0 }
 0x2d4   : > { %1125 = vrot.lane.b32.xlu0 %v991_v31, %s2174_s18 }
 0x2d5   : > { %1127 = vrot.lane.b32.xlu1 %v993_v10, %s2174_s18 }
 0x2d8   : > { %1145 = vrot.lane.b32.xlu0 %v916_v56, %s2175_s21 }
 0x2d9   : > { %1147 = vrot.lane.b32.xlu1 %v918_v61, %s2175_s21 }
 0x2dc   : > { %1149 = vrot.lane.b32.xlu0 %v997_v54, %s2175_s21 }
 0x2dd   : > { %1151 = vrot.lane.b32.xlu1 %v999_v58, %s2175_s21 }
 0x2e0   : > { %1169 = vrot.lane.b32.xlu0 %v920_v2, %s3093_s22 }
 0x2e1   : > { %1171 = vrot.lane.b32.xlu1 %v922_v44, %s3093_s22 }
 0x2e4   : > { %1173 = vrot.lane.b32.xlu0 %v1001_v18, %s3093_s22 }
 0x2e5   : > { %1175 = vrot.lane.b32.xlu1 %v1003_v4, %s3093_s22  ;;  %s2178_s22 = smov [#allocation6]  }
 0x2e8   : > { %1193 = vrot.lane.b32.xlu0 %v926_v8, %s3091_s23 }
 0x2e9   : > { %1195 = vrot.lane.b32.xlu1 %v928_v20, %s3091_s23 }
 0x2ec   : > { %1197 = vrot.lane.b32.xlu0 %v1007_v5, %s3091_s23 }
 0x2ed   : > { %1199 = vrot.lane.b32.xlu1 %v1009_v12, %s3091_s23  ;;  %s2102_s23 = sshll.u32 %s2178_s22, 4  ;;  %s2103_s23 = int_to_ptr.vmem [resolvable:$false] %s2102_s23 }
 0x2ee   : > { %s2104_s19 = scalar_lea.vmem %s2103_s23, 2048 }
 0x2f0   : > { %1462 = vperm.xlu0 %2051, %v1968_v41  }
 0x322   : > { %v1026_v48 = vpop.permute.xlu0 %1025 }
 0x323   : > { %v1028_v31 = vpop.permute.xlu1 %1027 }
 0x324   : > { %v1035_v36 = vsel %vm585_vm1, %v1026_v48, %v1028_v31 }
 0x325   : > { %v1042_v33 = vmul.f32 %v1035_v36, %v2443_v21 }
 0x326   : > { %v1030_v40 = vpop.permute.xlu0 %1029 }
 0x327   : > { %v1032_v10 = vpop.permute.xlu1 %1031  ;;  %v1034_v13 = vsel %vm585_vm1, %v1028_v31, %v1030_v40 }
 0x328   : > { %v1036_v41 = vsel %vm585_vm1, %v1032_v10, %v1026_v48  ;;  %v1033_v35 = vsel %vm585_vm1, %v1030_v40, %v1032_v10  ;;  %v1043_v62 = vmul.f32 %v1034_v13, %v2452_v26  ;;  %v1021_v26 = vadd.f32 %v1019_v45, %v2680_v51 }
 0x329   : > { %v1041_v31 = vmul.f32 %v1036_v41, %v2439_v19  ;;  %v1044_v9 = vmul.f32 %v1033_v35, %v2458_v29  ;;  %v1024_v19 = vadd.f32 %v1019_v45, %v2682_v30  ;;  %v1046_v29 = vadd.f32 %v1042_v33, %v1022_v63 }
 0x32a   : > { %v1050_v17 = vpop.permute.xlu0 %1049  ;;  %v1047_v45 = vadd.f32 %v1043_v62, %v1023_v0 }
 0x32b   : > { %v1052_v54 = vpop.permute.xlu1 %1051  ;;  %v1045_v63 = vadd.f32 %v1041_v31, %v1021_v26  ;;  %v1048_v33 = vadd.f32 %v1044_v9, %v1024_v19 }
 0x32c   : > { %v1059_v16 = vsel %vm610_vm2, %v1050_v17, %v1052_v54 }
 0x32d   : > { %v1066_v10 = vmul.f32 %v1059_v16, %v2463_v32 }
 0x32e   : > { %v1054_v56 = vpop.permute.xlu0 %1053 }
 0x32f   : > { %v1056_v58 = vpop.permute.xlu1 %1055  ;;  %v1058_v48 = vsel %vm610_vm2, %v1052_v54, %v1054_v56 }
 0x330   : > { %v1057_v14 = vsel %vm610_vm2, %v1054_v56, %v1056_v58  ;;  %v1060_v21 = vsel %vm610_vm2, %v1056_v58, %v1050_v17  ;;  %v1067_v35 = vmul.f32 %v1058_v48, %v2469_v37 }
 0x331   : > { %v1065_v58 = vmul.f32 %v1060_v21, %v2473_v39  ;;  %v1068_v51 = vmul.f32 %v1057_v14, %v2480_v42 }
 0x332   : > { %v1074_v61 = vpop.permute.xlu0 %1073  ;;  %v1071_v42 = vadd.f32 %v1067_v35, %v1047_v45 }
 0x333   : > { %v1076_v18 = vpop.permute.xlu1 %1075  ;;  %v1072_v13 = vadd.f32 %v1068_v51, %v1048_v33 }
 0x334   : > { %v1083_v40 = vsel %vm636_vm3, %v1074_v61, %v1076_v18 }
 0x335   : > { %v1090_v30 = vmul.f32 %v1083_v40, %v2490_v47 }
 0x336   : > { %v1078_v2 = vpop.permute.xlu0 %1077 }
 0x337   : > { %v1080_v4 = vpop.permute.xlu1 %1079  ;;  %v1082_v54 = vsel %vm636_vm3, %v1076_v18, %v1078_v2 }
 0x338   : > { %v1081_v56 = vsel %vm636_vm3, %v1078_v2, %v1080_v4  ;;  %v1084_v17 = vsel %vm636_vm3, %v1080_v4, %v1074_v61  ;;  %v1091_v37 = vmul.f32 %v1082_v54, %v2500_v53  ;;  %v1070_v2 = vadd.f32 %v1066_v10, %v1046_v29 }
 0x339   : > { %v1089_v36 = vmul.f32 %v1084_v17, %v2494_v49  ;;  %v1092_v61 = vmul.f32 %v1081_v56, %v2504_v55  ;;  %v1069_v4 = vadd.f32 %v1065_v58, %v1045_v63 }
 0x33a   : > { %v1098_v44 = vpop.permute.xlu0 %1097  ;;  %v1094_v41 = vadd.f32 %v1090_v30, %v1070_v2  ;;  %v1095_v62 = vadd.f32 %v1091_v37, %v1071_v42  ;;  %v3112_v37 = vld [vmem:[#allocation9_spill] sm:$0xff]  ;;  %v3113_v2 = vld [vmem:[#allocation10_spill] sm:$0xff] }
 0x33b   : > { %v1100_v5 = vpop.permute.xlu1 %1099  ;;  %v1093_v31 = vadd.f32 %v1089_v36, %v1069_v4 }
 0x33c   : > { %v1107_v32 = vsel %vm662_vm4, %v1098_v44, %v1100_v5 }
 0x33d   : > { %v1114_v47 = vmul.f32 %v1107_v32, %v2527_v24  ;;  %v1096_v24 = vadd.f32 %v1092_v61, %v1072_v13 }
 0x33e   : > { %v1102_v8 = vpop.permute.xlu0 %1101 }
 0x33f   : > { %v1104_v12 = vpop.permute.xlu1 %1103  ;;  %v1106_v49 = vsel %vm662_vm4, %v1100_v5, %v1102_v8  ;;  %v1118_v21 = vadd.f32 %v1114_v47, %v1094_v41 }
 0x340   : > { %v1108_v39 = vsel %vm662_vm4, %v1104_v12, %v1098_v44  ;;  %v1105_v55 = vsel %vm662_vm4, %v1102_v8, %v1104_v12 }
 0x341   : > { %v1113_v0 = vmul.f32 %v1108_v39, %v2512_v1  ;;  %v1115_v1 = vmul.f32 %v1106_v49, %v2540_v34  ;;  %v1116_v12 = vmul.f32 %v1105_v55, %v2520_v7  ;;  %v3115_v55 = vld [vmem:[#allocation13_spill] sm:$0xff] }
 0x342   : > { %v2725_v20 = vpop.permute.xlu0 %1121 }
 0x343   : > { %v1124_v22 = vpop.permute.xlu1 %1123  ;;  %v1117_v10 = vadd.f32 %v1113_v0, %v1093_v31  ;;  %v1119_v56 = vadd.f32 %v1115_v1, %v1095_v62  ;;  %v1120_v17 = vadd.f32 %v1116_v12, %v1096_v24 }
 0x344   : > { %v1131_v9 = vsel %vm688_vm5, %v2725_v20, %v1124_v22 }
 0x345   : > { %v1137_v40 = vmul.f32 %v1131_v9, %v2534_v28 }
 0x346   : > { %v1126_v27 = vpop.permute.xlu0 %1125 }
 0x347   : > { %v1128_v3 = vpop.permute.xlu1 %1127  ;;  %v1130_v48 = vsel %vm688_vm5, %v1124_v22, %v1126_v27  ;;  %v1141_v29 = vadd.f32 %v1137_v40, %v1117_v10 }
 0x348   : > { %v1129_v5 = vsel %vm688_vm5, %v1126_v27, %v1128_v3  ;;  %v1132_v8 = vsel %vm688_vm5, %v1128_v3, %v2725_v20  ;;  %v1138_v28 = vmul.f32 %v1130_v48, %v2561_v50 }
 0x349   : > { %v1139_v34 = vmul.f32 %v1129_v5, %v2567_v52  ;;  %v1140_v7 = vmul.f32 %v1132_v8, %v2547_v43 }
 0x34a   : > { %v1146_v11 = vpop.permute.xlu0 %1145 }
 0x34b   : > { %v1148_v38 = vpop.permute.xlu1 %1147 }
 0x34c   : > { %v1155_v14 = vsel %vm714_vm6, %v1146_v11, %v1148_v38 }
 0x34d   : > { %v1161_v27 = vmul.f32 %v1155_v14, %v2553_v46 }
 0x34e   : > { %v1150_v16 = vpop.permute.xlu0 %1149 }
 0x34f   : > { %v1152_v18 = vpop.permute.xlu1 %1151  ;;  %v1154_v22 = vsel %vm714_vm6, %v1148_v38, %v1150_v16  ;;  %v1165_v51 = vadd.f32 %v1161_v27, %v1141_v29  ;;  %v3119_v29 = vld [vmem:[#allocation15_spill] sm:$0xff] }
 0x350   : > { %v1153_v54 = vsel %vm714_vm6, %v1150_v16, %v1152_v18  ;;  %v1156_v20 = vsel %vm714_vm6, %v1152_v18, %v1146_v11  ;;  %v1162_v35 = vmul.f32 %v1154_v22, %v2585_v23  ;;  %v1142_v11 = vadd.f32 %v1138_v28, %v1118_v21 }
 0x351   : > { %v1163_v52 = vmul.f32 %v1153_v54, %v2592_v6  ;;  %v1164_v30 = vmul.f32 %v1156_v20, %v2574_v57  ;;  %v1143_v16 = vadd.f32 %v1139_v34, %v1119_v56  ;;  %v2063_v54 = vld [vmem:[%s3076_s6] sm:$0xff]   ;;  %v3117_v20 = vld [vmem:[#allocation14_spill] sm:$0xff]  ;;  %v2065_v56 = vld [vmem:[%s3076_s6 + $0x10] sm:$0xff]  }
 0x352   : > { %v1170_v53 = vpop.permute.xlu0 %1169  ;;  %v1166_v33 = vadd.f32 %v1162_v35, %v1142_v11  ;;  %v3120_v35 = vld [vmem:[#allocation17_spill] sm:$0xff] }
 0x353   : > { %v1172_v44 = vpop.permute.xlu1 %1171  ;;  %v1167_v61 = vadd.f32 %v1163_v52, %v1143_v16  ;;  %v2067_v52 = vld [vmem:[%s3076_s6 + $0x20] ss:$0 sps:$4 sm:$0xff]  }
 0x354   : > { %v1179_v26 = vsel %vm740_vm7, %v1170_v53, %v1172_v44 }
 0x355   : > { %v1185_v50 = vmul.f32 %v1179_v26, %v2579_v59  ;;  %v1144_v59 = vadd.f32 %v1140_v7, %v1120_v17  ;;  %v2066_v17 = vld [vmem:[%s3076_s6 + $0x18] sm:$0xff]  }
 0x356   : > { %v1174_v19 = vpop.permute.xlu0 %1173 }
 0x357   : > { %v1176_v3 = vpop.permute.xlu1 %1175  ;;  %v1178_v38 = vsel %vm740_vm7, %v1172_v44, %v1174_v19  ;;  %v1189_v6 = vadd.f32 %v1185_v50, %v1165_v51  ;;  %v1168_v42 = vadd.f32 %v1164_v30, %v1144_v59  ;;  %v3116_v44 = vld [vmem:[#allocation11_spill] sm:$0xff]  ;;  %v2069_v50 = vld [vmem:[#allocation2 + $0x40] sm:$0xff] }
 0x358   : > { %v1177_v46 = vsel %vm740_vm7, %v1174_v19, %v1176_v3  ;;  %v1180_v43 = vsel %vm740_vm7, %v1176_v3, %v1170_v53  ;;  %v1186_v32 = vmul.f32 %v1178_v38, %v2602_v25  ;;  %v3118_v38 = vld [vmem:[#allocation16_spill] sm:$0xff] }
 0x359   : > { %v1187_v45 = vmul.f32 %v1177_v46, %v2607_v60  ;;  %v1188_v18 = vmul.f32 %v1180_v43, %v3112_v37  ;;  %v3114_v60 = vld [vmem:[#allocation12_spill] sm:$0xff]  ;;  %v2064_v46 = vld [vmem:[%s3076_s6 + $0x8] sm:$0xff]  }
 0x35a   : > { %v1194_v58 = vpop.permute.xlu0 %1193  ;;  %v1190_v57 = vadd.f32 %v1186_v32, %v1166_v33 }
 0x35b   : > { %v1196_v23 = vpop.permute.xlu1 %1195  ;;  %v1191_v13 = vadd.f32 %v1187_v45, %v1167_v61  ;;  %v1192_v62 = vadd.f32 %v1188_v18, %v1168_v42 }
 0x35c   : > { %v1203_v63 = vsel %vm766_vm8, %v1194_v58, %v1196_v23 }
 0x35d   : > { %v1209_v36 = vmul.f32 %v1203_v63, %v3113_v2 }
 0x35e   : > { %v1198_v39 = vpop.permute.xlu0 %1197 }
 0x35f   : > { %v1213_v47 = vadd.f32 %v1209_v36, %v1189_v6  ;;  %v1202_v25 = vsel %vm766_vm8, %v1196_v23, %v1198_v39  ;;  %v1200_v4 = vpop.permute.xlu1 %1199 }
 0x360   : > { %v1210_v41 = vmul.f32 %v1202_v25, %v3114_v60  ;;  %v1201_v9 = vsel %vm766_vm8, %v1198_v39, %v1200_v4  ;;  %v1204_v53 = vsel %vm766_vm8, %v1200_v4, %v1194_v58 }
 0x361   : > { %v1217_v49 = vmax.f32 %v1213_v47, 0.0  ;;  %v1211_v0 = vmul.f32 %v1201_v9, %v3115_v55  ;;  %v1212_v31 = vmul.f32 %v1204_v53, %v3116_v44 }
 0x362   : > { %v1214_v24 = vadd.f32 %v1210_v41, %v1190_v57 }
 0x363   : > { %v1221_v48 = vpack.c.bf16 %v1217_v49, %v1217_v49  ;;  %v1215_v14 = vadd.f32 %v1211_v0, %v1191_v13  ;;  %v1216_v21 = vadd.f32 %v1212_v31, %v1192_v62 }
 0x364   : > { %v1218_v40 = vmax.f32 %v1214_v24, 0.0 }
 0x365   : > { %v1229_v5 = vrot.slane %v1221_v48, 4  ;;  %v1219_v8 = vmax.f32 %v1215_v14, 0.0  ;;  %v1220_v1 = vmax.f32 %v1216_v21, 0.0 }
 0x366   : > { %v1222_v12 = vpack.c.bf16 %v1218_v40, %v1218_v40 }
 0x367   : > { %1237 = vst [vmem:[#allocation2 + $0x20] sm:$0xf0] %v1229_v5  ;;  %v1223_v22 = vpack.c.bf16 %v1219_v8, %v1219_v8  ;;  %v1224_v26 = vpack.c.bf16 %v1220_v1, %v1220_v1  ;;  %v1687_v5 = vld [vmem:[%s3073_s3] sm:$0xff]  ;;  %v1688_v8 = vld [vmem:[%s3073_s3 + $0x8] sm:$0xff] }
 0x368   : > { %v1230_v19 = vrot.slane %v1222_v12, 4 }
 0x369   : > { %v1231_v10 = vrot.slane %v1223_v22, 4  ;;  %v1232_v28 = vrot.slane %v1224_v26, 4 }
 0x36a   : > { %1238 = vst [vmem:[#allocation2 + $0x28] sm:$0xf0] %v1230_v19 }
 0x36b   : > { %1239 = vst [vmem:[#allocation2 + $0x30] sm:$0xf0] %v1231_v10  ;;  %1240 = vst [vmem:[#allocation2 + $0x38] sm:$0xf0] %v1232_v28 }
 0x36e   : > { %v1254_v3 = vld [vmem:[#allocation2 + $0x20] sm:$0xff] }
 0x36f   : > { %v1463_v1 = vpop.permute.xlu0 %1462 }
 0x371   : > { %v1255_v27 = vld [vmem:[#allocation2 + $0x28] sm:$0xff] }
 0x372   : > { %1298 = vmatprep.subr.bf16.mxu0 %v1255_v27  ;;  %v1257_v34 = vld [vmem:[#allocation2 + $0x38] sm:$0xff]  ;;  %v1256_v7 = vld [vmem:[#allocation2 + $0x30] sm:$0xff] }
 0x373   : > { %1299 = vmatpush1.bf16.msra.mxu0 %v1254_v3  ;;  %1379 = vmatprep.subr.bf16.mxu1 %v1257_v34 }
 0x374   : > { %1380 = vmatpush1.bf16.msra.mxu1 %v1256_v7  ;;  %1708 = vmatprep.subr.bf16.mxu0 %v3117_v20 }
 0x375   : > { %1751 = vmatprep.subr.bf16.mxu1 %v3118_v38 }
 0x376   : > { %1958 = vmatmul.mubr.msk.bf16.vlgmr.msra.gmra.mrb[40].mxu0 %vm836_vm9, %v2063_v54 }
 0x377   : > { %1963 = vmatmul.mubr.msk.bf16.vlgmr.msra.gmra.mrb[40].mxu1 %vm836_vm9, %v2063_v54  ;;  %1709 = vmatpush1.bf16.msra.mxu0 %v3119_v29 }
 0x378   : > { %1710 = vmatprep.subr.bf16.mxu0 %v1255_v27  ;;  %1752 = vmatpush1.bf16.msra.mxu1 %v3120_v35 }
 0x379   : > { %1753 = vmatprep.subr.bf16.mxu1 %v1257_v34  ;;  %1338 = vmatprep.mubr.bf16.mxu0 %v2069_v50 }
 0x37a   : > { %1419 = vmatprep.mubr.bf16.mxu1 %v2069_v50 }
 0x37b   : > { %1711 = vmatpush1.bf16.msra.mxu0 %v1254_v3 }
 0x37c   : > { %1754 = vmatpush1.bf16.msra.mxu1 %v1256_v7 }
 0x37e   : > { %1959 = vmatmul.mubr.msk.bf16.gmra.mrb[44].mxu0 %vm836_vm9, %v2064_v46 }
 0x37f   : > { %1964 = vmatmul.mubr.msk.bf16.gmra.mrb[44].mxu1 %vm836_vm9, %v2064_v46  ;;  %1348 = vmatprep.mubr.bf16.mxu0 %v2069_v50 }
 0x380   : > { %1429 = vmatprep.mubr.bf16.mxu1 %v2069_v50 }
 0x386   : > { %1960 = vmatmul.mubr.msk.bf16.gmra.mrb[48].mxu0 %vm836_vm9, %v2065_v56 }
 0x387   : > { %1965 = vmatmul.mubr.msk.bf16.gmra.mrb[48].mxu1 %vm836_vm9, %v2065_v56  ;;  %1358 = vmatprep.mubr.bf16.mxu0 %v2069_v50 }
 0x388   : > { %1439 = vmatprep.mubr.bf16.mxu1 %v2069_v50 }
 0x38e   : > { %1961 = vmatmul.mubr.msk.bf16.gmra.mrb[52].mxu0 %vm836_vm9, %v2066_v17 }
 0x38f   : > { %1966 = vmatmul.mubr.msk.bf16.gmra.mrb[52].mxu1 %vm836_vm9, %v2066_v17  ;;  %1368 = vmatprep.mubr.bf16.mxu0 %v2069_v50  ;;  %v1482_v17 = vld [vmem:[#allocation3 + $0x8] sm:$0xff] }
 0x390   : > { %1449 = vmatprep.mubr.bf16.mxu1 %v2069_v50 }
 0x396   : > { %1962 = vmatmul.mubr.msk.bf16.gmra.mrb[56].mxu0 %vm836_vm9, %v2067_v52 }
 0x397   : > { %1967 = vmatmul.mubr.msk.bf16.gmra.mrb[56].mxu1 %vm836_vm9, %v2067_v52  ;;  %1740 = vmatprep.mubr.bf16.mxu0 %v2069_v50 }
 0x398   : > { %1783 = vmatprep.mubr.bf16.mxu1 %v2069_v50 }
 0x449   : > { %v1330_v43 = vpop.f32.mrb[40].mxu0 }
 0x44a   : > { %1469 = vrot.lane.b32.xlu1 %v1330_v43, %s2170_s26  ;;  %v1332_v58 = vpop.f32.mrb[41].mxu0  ;;  %v1411_v11 = vpop.f32.mrb[40].mxu1 }
 0x44b   : > { %1471 = vrot.lane.b32.xlu0 %v1332_v58, %s2170_s26  ;;  %v1413_v51 = vpop.f32.mrb[41].mxu1  ;;  %v1334_v30 = vpop.f32.mrb[42].mxu0  ;;  %v1483_v58 = vld [vmem:[#allocation3 + $0x10] sm:$0xff] }
 0x44c   : > { %v1336_v32 = vpop.f32.mrb[43].mxu0  ;;  %v1415_v23 = vpop.f32.mrb[42].mxu1 }
 0x44d   : > { %v1417_v16 = vpop.f32.mrb[43].mxu1 }
 0x44e   : > { %1473 = vrot.lane.b32.xlu1 %v1411_v11, %s2170_s26 }
 0x44f   : > { %1475 = vrot.lane.b32.xlu0 %v1413_v51, %s2170_s26  ;;  %s3121_s26 = smov 112   ;;  %v1481_v51 = vld [vmem:[#allocation3] sm:$0xff] }
 0x451   : > { %v1340_v59 = vpop.f32.mrb[44].mxu0 }
 0x452   : > { %1493 = vrot.lane.b32.xlu1 %v1334_v30, %s2171_s10  ;;  %v1421_v45 = vpop.f32.mrb[44].mxu1  ;;  %v1342_v63 = vpop.f32.mrb[45].mxu0 }
 0x453   : > { %1495 = vrot.lane.b32.xlu0 %v1336_v32, %s2171_s10  ;;  %v1423_v33 = vpop.f32.mrb[45].mxu1  ;;  %v1344_v6 = vpop.f32.mrb[46].mxu0 }
 0x454   : > { %v1346_v37 = vpop.f32.mrb[47].mxu0  ;;  %v1425_v18 = vpop.f32.mrb[46].mxu1 }
 0x455   : > { %v1427_v2 = vpop.f32.mrb[47].mxu1 }
 0x456   : > { %1497 = vrot.lane.b32.xlu1 %v1415_v23, %s2171_s10  ;;  %v1484_v23 = vld [vmem:[#allocation3 + $0x18] sm:$0xff] }
 0x457   : > { %1499 = vrot.lane.b32.xlu0 %v1417_v16, %s2171_s10 }
 0x459   : > { %v2866_v36 = vpop.f32.mrb[48].mxu0 }
 0x45a   : > { %v2868_v61 = vpop.f32.mrb[48].mxu1  ;;  %1517 = vrot.lane.b32.xlu1 %v1340_v59, %s2172_s12  ;;  %v2871_v39 = vpop.f32.mrb[49].mxu0  ;;  %v1465_v59 = vadd.f32 %v1463_v1, %v2866_v36 }
 0x45b   : > { %v2873_v42 = vpop.f32.mrb[49].mxu1  ;;  %1519 = vrot.lane.b32.xlu0 %v1342_v63, %s2172_s12  ;;  %v1354_v57 = vpop.f32.mrb[50].mxu0  ;;  %v1506_v63 = vld [vmem:[#allocation3 + $0x28] sm:$0xff] }
 0x45c   : > { %v1356_v47 = vpop.f32.mrb[51].mxu0  ;;  %v1435_v25 = vpop.f32.mrb[50].mxu1 }
 0x45d   : > { %v1437_v4 = vpop.f32.mrb[51].mxu1 }
 0x45e   : > { %1521 = vrot.lane.b32.xlu1 %v1421_v45, %s2172_s12 }
 0x45f   : > { %1523 = vrot.lane.b32.xlu0 %v1423_v33, %s2172_s12  ;;  %s3122_s12 = smov 111  }
 0x461   : > { %v1360_v13 = vpop.f32.mrb[52].mxu0 }
 0x462   : > { %1541 = vrot.lane.b32.xlu1 %v1344_v6, %s2173_s13  ;;  %v1362_v60 = vpop.f32.mrb[53].mxu0  ;;  %v1441_v41 = vpop.f32.mrb[52].mxu1  ;;  %v1466_v6 = vadd.f32 %v1463_v1, %v2871_v39 }
 0x463   : > { %1543 = vrot.lane.b32.xlu0 %v1346_v37, %s2173_s13  ;;  %v1443_v9 = vpop.f32.mrb[53].mxu1  ;;  %v1364_v53 = vpop.f32.mrb[54].mxu0 }
 0x464   : > { %v1366_v62 = vpop.f32.mrb[55].mxu0  ;;  %v1445_v49 = vpop.f32.mrb[54].mxu1 }
 0x465   : > { %v1447_v55 = vpop.f32.mrb[55].mxu1 }
 0x466   : > { %1545 = vrot.lane.b32.xlu1 %v1425_v18, %s2173_s13 }
 0x467   : > { %1547 = vrot.lane.b32.xlu0 %v1427_v2, %s2173_s13  ;;  %v1507_v2 = vld [vmem:[#allocation3 + $0x30] sm:$0xff] }
 0x469   : > { %v1370_v0 = vpop.f32.mrb[56].mxu0 }
 0x46a   : > { %1565 = vrot.lane.b32.xlu1 %v1354_v57, %s2174_s18  ;;  %v1372_v44 = vpop.f32.mrb[57].mxu0  ;;  %v1451_v31 = vpop.f32.mrb[56].mxu1 }
 0x46b   : > { %1567 = vrot.lane.b32.xlu0 %v1356_v47, %s2174_s18  ;;  %v1453_v24 = vpop.f32.mrb[57].mxu1  ;;  %v1374_v48 = vpop.f32.mrb[58].mxu0 }
 0x46c   : > { %v1375_v14 = vpop.f32.mrb[59].mxu0  ;;  %v1455_v21 = vpop.f32.mrb[58].mxu1  ;;  %v1532_v48 = vld [vmem:[#allocation3 + $0x58] sm:$0xff] }
 0x46d   : > { %v1456_v40 = vpop.f32.mrb[59].mxu1 }
 0x46e   : > { %1569 = vrot.lane.b32.xlu1 %v1435_v25, %s2174_s18 }
 0x46f   : > { %1571 = vrot.lane.b32.xlu0 %v1437_v4, %s2174_s18  ;;  %v1505_v4 = vld [vmem:[#allocation3 + $0x20] sm:$0xff]  ;;  %s3028_s18 = scalar_lea.sflag [#allocation5], %s314_s20 }
 0x472   : > { %1589 = vrot.lane.b32.xlu1 %v1360_v13, %s2175_s21  ;;  %v1508_v13 = vld [vmem:[#allocation3 + $0x38] sm:$0xff] }
 0x473   : > { %1591 = vrot.lane.b32.xlu0 %v1362_v60, %s2175_s21 }
 0x476   : > { %1593 = vrot.lane.b32.xlu1 %v1441_v41, %s2175_s21  ;;  %v1530_v41 = vld [vmem:[#allocation3 + $0x48] sm:$0xff] }
 0x477   : > { %1595 = vrot.lane.b32.xlu0 %v1443_v9, %s2175_s21 }
 0x47a   : > { %1613 = vrot.lane.b32.xlu1 %v1364_v53, %s3121_s26  ;;  %v1467_v53 = vadd.f32 %v1463_v1, %v2868_v61 }
 0x47b   : > { %1615 = vrot.lane.b32.xlu0 %v1366_v62, %s3121_s26  ;;  %v1468_v62 = vadd.f32 %v1463_v1, %v2873_v42 }
 0x47e   : > { %1617 = vrot.lane.b32.xlu1 %v1445_v49, %s3121_s26 }
 0x47f   : > { %1619 = vrot.lane.b32.xlu0 %v1447_v55, %s3121_s26  ;;  %v1531_v55 = vld [vmem:[#allocation3 + $0x50] sm:$0xff]  ;;  %s1834_s26 = sshll.u32 %s316_s17, 4  ;;  %s3019_s26 = int_to_ptr.vmem [resolvable:$true] %s1834_s26 }
 0x480   : > { %s2098_s21 = scalar_lea.vmem %s3019_s26, 1024  ;;  %p2105_p2 = scmp.lt.s32.totalorder %s3019_s26, %s2103_s23 }
 0x481   : > { %p2099_p6 = scmp.ne.s32.totalorder %s3019_s26, %s2098_s21  ;;  %p2106_p3 = scmp.lt.s32.totalorder %s2104_s19, %s2098_s21 }
 0x482   : > { %1637 = vrot.lane.b32.xlu1 %v1370_v0, %s3122_s12 }
 0x483   : > { %1639 = vrot.lane.b32.xlu0 %v1372_v44, %s3122_s12  ;;  %p2100_p10 = pnand %p2099_p6, %p3123_p9  ;;  %p2107_p4 = por %p2106_p3, %p2105_p2 }
 0x485   : > { %p2101_p12 = pneg %p2100_p10 }
 0x486   : > { %1641 = vrot.lane.b32.xlu1 %v1451_v31, %s3122_s12 }
 0x487   : > { %1643 = vrot.lane.b32.xlu0 %v1453_v24, %s3122_s12  ;;  %v1529_v24 = vld [vmem:[#allocation3 + $0x40] sm:$0xff]  ;;  %s1988_s12 = sshll.u32 %s2246_s9, 10  ;;  %p2108_p7 = pnand %p2107_p4, %p2101_p12 }
 0x488   : > { %s3024_s13 = scalar_lea.hbm %s3078_s8, %s1988_s12 }
 0x48a   : > { %1691 = vperm.xlu1 %2052, %v1687_v5  }
 0x48b   : > { %1696 = vperm.xlu0 %2051, %v1688_v8   ;;  %v1554_v8 = vld [vmem:[#allocation3 + $0x68] sm:$0xff] }
 0x4bc   : > { %v1470_v12 = vpop.permute.xlu1 %1469 }
 0x4bd   : > { %v1472_v22 = vpop.permute.xlu0 %1471 }
 0x4be   : > { %v1479_v52 = vsel %vm585_vm1, %v1470_v12, %v1472_v22 }
 0x4bf   : > { %v1486_v45 = vmul.f32 %v1482_v17, %v1479_v52 }
 0x4c0   : > { %v1474_v26 = vpop.permute.xlu1 %1473 }
 0x4c1   : > { %v1476_v19 = vpop.permute.xlu0 %1475  ;;  %v1478_v11 = vsel %vm585_vm1, %v1472_v22, %v1474_v26  ;;  %v1490_v44 = vadd.f32 %v1486_v45, %v1466_v6 }
 0x4c2   : > { %v1480_v30 = vsel %vm585_vm1, %v1476_v19, %v1470_v12  ;;  %v1477_v16 = vsel %vm585_vm1, %v1474_v26, %v1476_v19  ;;  %v1487_v37 = vmul.f32 %v1483_v58, %v1478_v11  ;;  %v1577_v11 = vld [vmem:[#allocation3 + $0x80] sm:$0xff] }
 0x4c3   : > { %v1485_v18 = vmul.f32 %v1481_v51, %v1480_v30  ;;  %v1488_v25 = vmul.f32 %v1484_v23, %v1477_v16  ;;  %v1555_v16 = vld [vmem:[#allocation3 + $0x70] sm:$0xff] }
 0x4c4   : > { %v1494_v10 = vpop.permute.xlu1 %1493  ;;  %v1491_v12 = vadd.f32 %v1487_v37, %v1467_v53  ;;  %v1625_v53 = vld [vmem:[#allocation3 + $0xc0] sm:$0xff] }
 0x4c5   : > { %v1496_v28 = vpop.permute.xlu0 %1495  ;;  %v1489_v22 = vadd.f32 %v1485_v18, %v1465_v59  ;;  %v1492_v26 = vadd.f32 %v1488_v25, %v1468_v62  ;;  %v1578_v18 = vld [vmem:[#allocation3 + $0x88] sm:$0xff] }
 0x4c6   : > { %v1503_v33 = vsel %vm610_vm2, %v1494_v10, %v1496_v28 }
 0x4c7   : > { %v1510_v49 = vmul.f32 %v1506_v63, %v1503_v33 }
 0x4c8   : > { %v1498_v27 = vpop.permute.xlu1 %1497 }
 0x4c9   : > { %v1500_v54 = vpop.permute.xlu0 %1499  ;;  %v1502_v57 = vsel %vm610_vm2, %v1496_v28, %v1498_v27  ;;  %v1514_v28 = vadd.f32 %v1510_v49, %v1490_v44 }
 0x4ca   : > { %v1501_v36 = vsel %vm610_vm2, %v1498_v27, %v1500_v54  ;;  %v1504_v60 = vsel %vm610_vm2, %v1500_v54, %v1494_v10  ;;  %v1511_v31 = vmul.f32 %v1507_v2, %v1502_v57  ;;  %v1601_v57 = vld [vmem:[#allocation3 + $0xa0] sm:$0xff] }
 0x4cb   : > { %v1509_v40 = vmul.f32 %v1505_v4, %v1504_v60  ;;  %v1512_v5 = vmul.f32 %v1508_v13, %v1501_v36  ;;  %v1579_v13 = vld [vmem:[#allocation3 + $0x90] sm:$0xff]  ;;  %v1580_v36 = vld [vmem:[#allocation3 + $0x98] sm:$0xff] }
 0x4cc   : > { %v1518_v3 = vpop.permute.xlu1 %1517 }
 0x4cd   : > { %v1520_v34 = vpop.permute.xlu0 %1519  ;;  %v1513_v17 = vadd.f32 %v1509_v40, %v1489_v22  ;;  %v1516_v52 = vadd.f32 %v1512_v5, %v1492_v26  ;;  %v1628_v26 = vld [vmem:[#allocation3 + $0xd8] sm:$0xff] }
 0x4ce   : > { %v1527_v39 = vsel %vm636_vm3, %v1518_v3, %v1520_v34 }
 0x4cf   : > { %v1534_v61 = vmul.f32 %v1530_v41, %v1527_v39  ;;  %v1602_v41 = vld [vmem:[#allocation3 + $0xa8] sm:$0xff] }
 0x4d0   : > { %v1522_v7 = vpop.permute.xlu1 %1521 }
 0x4d1   : > { %v1524_v20 = vpop.permute.xlu0 %1523  ;;  %v1526_v0 = vsel %vm636_vm3, %v1520_v34, %v1522_v7  ;;  %v1553_v34 = vld [vmem:[#allocation3 + $0x60] sm:$0xff]  ;;  %v1538_v58 = vadd.f32 %v1534_v61, %v1514_v28 }
 0x4d2   : > { %v1525_v14 = vsel %vm636_vm3, %v1522_v7, %v1524_v20  ;;  %v1528_v21 = vsel %vm636_vm3, %v1524_v20, %v1518_v3  ;;  %v1535_v19 = vmul.f32 %v1531_v55, %v1526_v0  ;;  %v1515_v7 = vadd.f32 %v1511_v31, %v1491_v12 }
 0x4d3   : > { %v1533_v27 = vmul.f32 %v1529_v24, %v1528_v21  ;;  %v1536_v54 = vmul.f32 %v1532_v48, %v1525_v14  ;;  %v1604_v48 = vld [vmem:[#allocation3 + $0xb8] sm:$0xff]  ;;  %v1626_v14 = vld [vmem:[#allocation3 + $0xc8] sm:$0xff] }
 0x4d4   : > { %v1542_v38 = vpop.permute.xlu1 %1541  ;;  %v1539_v23 = vadd.f32 %v1535_v19, %v1515_v7 }
 0x4d5   : > { %v2904_v29 = vpop.permute.xlu0 %1543  ;;  %v1537_v6 = vadd.f32 %v1533_v27, %v1513_v17  ;;  %v1540_v37 = vadd.f32 %v1536_v54, %v1516_v52 }
 0x4d6   : > { %v1551_v42 = vsel %vm662_vm4, %v1542_v38, %v2904_v29 }
 0x4d7   : > { %v1558_v20 = vmul.f32 %v1554_v8, %v1551_v42  ;;  %v1627_v8 = vld [vmem:[#allocation3 + $0xd0] sm:$0xff] }
 0x4d8   : > { %v2906_v35 = vpop.permute.xlu1 %1545 }
 0x4d9   : > { %v2908_v50 = vpop.permute.xlu0 %1547  ;;  %v1550_v59 = vsel %vm662_vm4, %v2904_v29, %v2906_v35  ;;  %v1562_v25 = vadd.f32 %v1558_v20, %v1538_v58 }
 0x4da   : > { %v1552_v3 = vsel %vm662_vm4, %v2908_v50, %v1542_v38  ;;  %v1556_v38 = vld [vmem:[#allocation3 + $0x78] sm:$0xff]  ;;  %v1549_v45 = vsel %vm662_vm4, %v2906_v35, %v2908_v50 }
 0x4db   : > { %v1557_v63 = vmul.f32 %v1553_v34, %v1552_v3  ;;  %v1560_v60 = vmul.f32 %v1556_v38, %v1549_v45  ;;  %v1651_v38 = vld [vmem:[#allocation3 + $0xf0] sm:$0xff]  ;;  %v1652_v45 = vld [vmem:[#allocation3 + $0xf8] sm:$0xff] }
 0x4dc   : > { %v2910_v46 = vpop.permute.xlu1 %1565 }
 0x4dd   : > { %v2912_v56 = vpop.permute.xlu0 %1567  ;;  %v1561_v55 = vadd.f32 %v1557_v63, %v1537_v6  ;;  %v1564_v12 = vadd.f32 %v1560_v60, %v1540_v37 }
 0x4de   : > { %v1575_v51 = vsel %vm688_vm5, %v2910_v46, %v2912_v56 }
 0x4df   : > { %v1581_v4 = vmul.f32 %v1577_v11, %v1575_v51 }
 0x4e0   : > { %v2916_v43 = vpop.permute.xlu1 %1569 }
 0x4e1   : > { %v2922_v32 = vpop.permute.xlu0 %1571  ;;  %v1574_v2 = vsel %vm688_vm5, %v2912_v56, %v2916_v43  ;;  %v1559_v56 = vmul.f32 %v1555_v16, %v1550_v59  ;;  %v1585_v40 = vadd.f32 %v1581_v4, %v1561_v55  ;;  %v1650_v16 = vld [vmem:[#allocation3 + $0xe8] sm:$0xff] }
 0x4e2   : > { %v1573_v35 = vsel %vm688_vm5, %v2916_v43, %v2922_v32  ;;  %v1576_v50 = vsel %vm688_vm5, %v2922_v32, %v2910_v46  ;;  %v1582_v0 = vmul.f32 %v1578_v18, %v1574_v2  ;;  %v1603_v43 = vld [vmem:[#allocation3 + $0xb0] sm:$0xff] }
 0x4e3   : > { %v1583_v46 = vmul.f32 %v1579_v13, %v1573_v35  ;;  %v1584_v32 = vmul.f32 %v1580_v36, %v1576_v50 }
 0x4e4   : > { %v2932_v47 = vpop.permute.xlu1 %1589 }
 0x4e5   : > { %v1592_v9 = vpop.permute.xlu0 %1591  ;;  %v1588_v20 = vadd.f32 %v1584_v32, %v1564_v12  ;;  %v1796_v12 = vld [vmem:[%s2330_s25 + $0x10] sm:$0xff] }
 0x4e6   : > { %v1599_v29 = vsel %vm714_vm6, %v2932_v47, %v1592_v9 }
 0x4e7   : > { %v1605_v44 = vmul.f32 %v1601_v57, %v1599_v29 }
 0x4e8   : > { %v1594_v1 = vpop.permute.xlu1 %1593 }
 0x4e9   : > { %v1596_v10 = vpop.permute.xlu0 %1595  ;;  %v1598_v39 = vsel %vm714_vm6, %v1592_v9, %v1594_v1  ;;  %v1609_v27 = vadd.f32 %v1605_v44, %v1585_v40  ;;  %v2068_v44 = vld [vmem:[%s3077_s7] sm:$0xff]   ;;  %v1795_v40 = vld [vmem:[%s2330_s25 + $0x8] sm:$0xff] }
 0x4ea   : > { %v1597_v31 = vsel %vm714_vm6, %v1594_v1, %v1596_v10  ;;  %v1600_v9 = vsel %vm714_vm6, %v1596_v10, %v2932_v47  ;;  %v1606_v5 = vmul.f32 %v1602_v41, %v1598_v39  ;;  %v1563_v1 = vadd.f32 %v1559_v56, %v1539_v23  ;;  %v1649_v47 = vld [vmem:[#allocation3 + $0xe0] sm:$0xff] }
 0x4eb   : > { %v1607_v22 = vmul.f32 %v1603_v43, %v1597_v31  ;;  %v1586_v10 = vadd.f32 %v1582_v0, %v1562_v25  ;;  %v1608_v54 = vmul.f32 %v1604_v48, %v1600_v9  ;;  %v1794_v9 = vld [vmem:[%s2330_s25] sm:$0xff] }
 0x4ec   : > { %v1614_v30 = vpop.permute.xlu1 %1613  ;;  %v1587_v7 = vadd.f32 %v1583_v46, %v1563_v1 }
 0x4ed   : > { %v1616_v33 = vpop.permute.xlu0 %1615  ;;  %v1610_v58 = vadd.f32 %v1606_v5, %v1586_v10  ;;  %v1612_v63 = vadd.f32 %v1608_v54, %v1588_v20 }
 0x4ee   : > { %v1623_v62 = vsel %vm740_vm7, %v1614_v30, %v1616_v33  ;;  %v1611_v59 = vadd.f32 %v1607_v22, %v1587_v7 }
 0x4ef   : > { %v1629_v61 = vmul.f32 %v1625_v53, %v1623_v62 }
 0x4f0   : > { %v1618_v49 = vpop.permute.xlu1 %1617 }
 0x4f1   : > { %v1620_v24 = vpop.permute.xlu0 %1619  ;;  %v1622_v21 = vsel %vm740_vm7, %v1616_v33, %v1618_v49  ;;  %v1633_v11 = vadd.f32 %v1629_v61, %v1609_v27  ;;  %v1972_v61 = vld [vmem:[%s2330_s25 + $0x20] sm:$0xff]  ;;  %v1797_v27 = vld [vmem:[%s2330_s25 + $0x18] sm:$0xff] }
 0x4f2   : > { %v1621_v42 = vsel %vm740_vm7, %v1618_v49, %v1620_v24  ;;  %v1624_v19 = vsel %vm740_vm7, %v1620_v24, %v1614_v30  ;;  %v1630_v34 = vmul.f32 %v1626_v14, %v1622_v21 }
 0x4f3   : > { %v1631_v17 = vmul.f32 %v1627_v8, %v1621_v42  ;;  %v1632_v51 = vmul.f32 %v1628_v26, %v1624_v19  ;;  %v1973_v26 = vld [vmem:[%s2330_s25 + $0x28] sm:$0xff] }
 0x4f4   : > { %v1638_v28 = vpop.permute.xlu1 %1637  ;;  %v1634_v33 = vadd.f32 %v1630_v34, %v1610_v58  ;;  %v1974_v34 = vld [vmem:[%s2330_s25 + $0x30] sm:$0xff]  ;;  %v1975_v58 = vld [vmem:[%s2330_s25 + $0x38] sm:$0xff] }
 0x4f5   : > { %v1640_v3 = vpop.permute.xlu0 %1639  ;;  %v1635_v2 = vadd.f32 %v1631_v17, %v1611_v59  ;;  %v1636_v4 = vadd.f32 %v1632_v51, %v1612_v63 }
 0x4f6   : > { %v1647_v52 = vsel %vm766_vm8, %v1638_v28, %v1640_v3 }
 0x4f7   : > { %v1653_v23 = vmul.f32 %v1649_v47, %v1647_v52 }
 0x4f8   : > { %v1642_v30 = vpop.permute.xlu1 %1641 }
 0x4f9   : > { %v1657_v6 = vadd.f32 %v1653_v23, %v1633_v11  ;;  %v1646_v37 = vsel %vm766_vm8, %v1640_v3, %v1642_v30  ;;  %v1644_v18 = vpop.permute.xlu0 %1643 }
 0x4fa   : > { %v1654_v57 = vmul.f32 %v1650_v16, %v1646_v37  ;;  %v1645_v29 = vsel %vm766_vm8, %v1642_v30, %v1644_v18  ;;  %v1648_v25 = vsel %vm766_vm8, %v1644_v18, %v1638_v28 }
 0x4fb   : > { %v1661_v13 = vmax.f32 %v1657_v6, 0.0  ;;  %v1655_v36 = vmul.f32 %v1651_v38, %v1645_v29  ;;  %v1656_v35 = vmul.f32 %v1652_v45, %v1648_v25 }
 0x4fc   : > { %v1658_v50 = vadd.f32 %v1654_v57, %v1634_v33 }
 0x4fd   : > { %v1665_v56 = vpack.c.bf16 %v1661_v13, %v1661_v13  ;;  %v1659_v60 = vadd.f32 %v1655_v36, %v1635_v2  ;;  %v1660_v41 = vadd.f32 %v1656_v35, %v1636_v4 }
 0x4fe   : > { %v1662_v39 = vmax.f32 %v1658_v50, 0.0 }
 0x4ff   : > { %1669 = vst [vmem:[#allocation2 + $0x40] sm:$0xf] %v1665_v56  ;;  %v1663_v53 = vmax.f32 %v1659_v60, 0.0  ;;  %v1664_v62 = vmax.f32 %v1660_v41, 0.0 }
 0x500   : > { %v1666_v49 = vpack.c.bf16 %v1662_v39, %v1662_v39 }
 0x501   : > { %v1667_v55 = vpack.c.bf16 %v1663_v53, %v1663_v53  ;;  %v1668_v0 = vpack.c.bf16 %v1664_v62, %v1664_v62 }
 0x502   : > { %1670 = vst [vmem:[#allocation2 + $0x48] sm:$0xf] %v1666_v49 }
 0x503   : > { %1671 = vst [vmem:[#allocation2 + $0x50] sm:$0xf] %v1667_v55  ;;  %1672 = vst [vmem:[#allocation2 + $0x58] sm:$0xf] %v1668_v0 }
 0x506   : > { %v1683_v43 = vld [vmem:[#allocation2 + $0x40] sm:$0xff] }
 0x509   : > { %v1684_v15 = vld [vmem:[#allocation2 + $0x48] sm:$0xff]  ;;  %v1692_v46 = vpop.permute.xlu1 %1691 }
 0x50a   : > { %1712 = vmatprep.subr.bf16.mxu0 %v1684_v15  ;;  %v1686_v31 = vld [vmem:[#allocation2 + $0x58] sm:$0xff]  ;;  %v1685_v24 = vld [vmem:[#allocation2 + $0x50] sm:$0xff]  ;;  %v1697_v32 = vpop.permute.xlu0 %1696 }
 0x50b   : > { %1713 = vmatpush1.bf16.msra.mxu0 %v1683_v43  ;;  %1755 = vmatprep.subr.bf16.mxu1 %v1686_v31 }
 0x50c   : > { %1756 = vmatpush1.bf16.msra.mxu1 %v1685_v24 }
 0x50e   : > { %1970 = vmatmul.mubr.msk.bf16.vlgmr.msra.gmra.mrb[60].mxu0 %vm1704_vm10, %v2068_v44 }
 0x50f   : > { %1971 = vmatmul.mubr.msk.bf16.vlgmr.msra.gmra.mrb[60].mxu1 %vm1704_vm10, %v2068_v44 }
 0x5e1   : > { %v1742_v48 = vpop.f32.mrb[60].mxu0 }
 0x5e2   : > { %v1743_v14 = vadd.f32 %v1742_v48, %v1692_v46  ;;  %v1744_v21 = vpop.f32.mrb[61].mxu0  ;;  %v1785_v5 = vpop.f32.mrb[60].mxu1 }
 0x5e3   : > { %v1745_v8 = vadd.f32 %v1744_v21, %v1692_v46  ;;  %v1786_v42 = vadd.f32 %v1785_v5, %v1692_v46  ;;  %v1746_v1 = vpop.f32.mrb[62].mxu0  ;;  %v1787_v22 = vpop.f32.mrb[61].mxu1 }
 0x5e4   : > { %v1798_v19 = vadd.f32 %v1794_v9, %v1743_v14  ;;  %v1747_v28 = vadd.f32 %v1746_v1, %v1697_v32  ;;  %v1788_v47 = vadd.f32 %v1787_v22, %v1692_v46  ;;  %v1748_v10 = vpop.f32.mrb[63].mxu0  ;;  %v1789_v54 = vpop.f32.mrb[62].mxu1 }
 0x5e5   : > { %v1799_v3 = vadd.f32 %v1795_v40, %v1745_v8  ;;  %v1810_v7 = vadd.f32 %v1972_v61, %v1786_v42  ;;  %v1749_v20 = vadd.f32 %v1748_v10, %v1697_v32  ;;  %v1790_v17 = vadd.f32 %v1789_v54, %v1697_v32  ;;  %v1791_v52 = vpop.f32.mrb[63].mxu1 }
 0x5e6   : > { %1802 = vst [vmem:[%s316_s17] sm:$0xff] %v1798_v19  ;;  %v1800_v11 = vadd.f32 %v1796_v12, %v1747_v28  ;;  %v1811_v51 = vadd.f32 %v1973_v26, %v1788_v47  ;;  %v1792_v23 = vadd.f32 %v1791_v52, %v1697_v32 }
 0x5e7   : > { %1803 = vst [vmem:[%s316_s17 + $0x8] sm:$0xff] %v1799_v3  ;;  %1976 = vst [vmem:[%s316_s17 + $0x20] sm:$0xff] %v1810_v7  ;;  %v1801_v16 = vadd.f32 %v1797_v27, %v1749_v20  ;;  %v1812_v59 = vadd.f32 %v1974_v34, %v1790_v17 }
 0x5e8   : > { %1804 = vst [vmem:[%s316_s17 + $0x10] sm:$0xff] %v1800_v11  ;;  %1977 = vst [vmem:[%s316_s17 + $0x28] sm:$0xff] %v1811_v51  ;;  %v1813_v30 = vadd.f32 %v1975_v58, %v1792_v23 }
 0x5e9   : > { %1805 = vst [vmem:[%s316_s17 + $0x18] sm:$0xff] %v1801_v16  ;;  %1978 = vst [vmem:[%s316_s17 + $0x30] sm:$0xff] %v1812_v59 }
 0x5ea   : > { %1979 = vst [vmem:[%s316_s17 + $0x38] sm:$0xff] %v1813_v30 }
 0x5eb   : > { %2111 = shalt.err (!%p2108_p7)
}
 0x5ec   : > { %s2112_s20 = scalar_lea.hbm %s3024_s13, 1024  ;;  %s2116_s12 = scalar_lea.hbm %s3078_s8, 2048 }
 0x5ed   : > { %p2113_p8 = scmp.ne.s32.totalorder %s3024_s13, %s2112_s20  ;;  %p2117_p1 = scmp.lt.u32.totalorder %s3024_s13, %s3078_s8 }
 0x5ee   : > { %p2118_p0 = scmp.lt.u32.totalorder %s2116_s12, %s2112_s20  ;;  %p2120_p6 = scmp.lt.u32.totalorder %s2112_s20, %s3024_s13 }
 0x5ef   : > { %p2114_p11 = pnand %p2113_p8, %p3123_p9 }
 0x5f0   : > { %p2119_p5 = por %p2118_p0, %p2117_p1 }
 0x5f1   : > { %p2115_p13 = pneg %p2114_p11 }
 0x5f2   : > { %p2121_p10 = por %p2120_p6, %p2119_p5 }
 0x5f4   : > { %p2122_p12 = pnand %p2121_p10, %p2115_p13 }
 0x5f6   : > { %2125 = shalt.err (!%p2122_p12)
}
 0x5f7   : > { %s2179_s21 = smov 256  }
 0x5f8   : > { %1993 = dma.vmem_to_hbm [thread:$0]  (%p3123_p9), %s3019_s26, 1024, %s3024_s13, %s3028_s18, %s2179_s21, %s2179_s21, %s2171_s10  }
 0x5f9 PF: > { %p2005_p2 = scmp.ge.s32.totalorder %s2164_s30, 2  ;;  %s1849_s22 = sand.u32 1, %s2152_s27  }
 0x5fa   : > { %p3124_p3 = scmp.ne.s32.totalorder %s3096_s16, 0  ;;  %s1850_s23 = scalar_lea.sflag [#allocation5], %s1849_s22 }
 0x5fc   : > { %p2000_p4 = pnand %p2005_p2, %p3124_p3 }
 0x5fe   : > { %2147 = dma.done.wait (!%p2000_p4), %s1850_s23, 1024  }
 0x5ff   : > { %2149 = vsyncadd (!%p2000_p4), %s1850_s23, 4294966272  ;;  %p19_p7 = scmp.ge.s32.totalorder %s2250_s11, 4   ;;  %s3125_s27 = smov %s2156_s28 }
 0x600   : > { %s3126_s28 = smov %s2160_s29  ;;  %s3127_s29 = smov %s2261_s14 }
 0x601   : > { %s3128_s30 = smov %s2250_s11  ;;  %21 = sbr.rel (!%p19_p7) target bundleno = 4 (0x4), region = 103 }
 0x608   :  { %1855 = vsyncpa [#allocation4], 1 }
 0x609   :  { %1857 = vsyncpa [#allocation4 + $0x1], 1 }
 0x60a   :  { %1858 = vsyncpa [#allocation5], 1 }
 0x60b   :  { %1860 = vsyncpa [#allocation5 + $0x1], 1 }

</bundles_post_ra>
